<compile_context>
chip_gen: v7x
topology: tpu7x:2x2x1
jax: 0.10.0
libtpu: 0.0.40
codegen_flags: <defaults>
</compile_context>

<pallas_src>
import jax
import jax.numpy as jnp
from jax import lax
from jax.experimental import pallas as pl
from jax.experimental.pallas import tpu as pltpu


# ----------------------------------------------------------------------------
# Fused kernel: conv1+ReLU+pool -> conv2+ReLU+pool -> fc1+ReLU
# One grid step == one batch element; everything resident in VMEM.
# ----------------------------------------------------------------------------
def _fused_kernel(x_ref, b1w_ref, b1b_ref, p1l_ref, p1r_ref,
                  b2w_ref, b2b_ref, p2l_ref, p2r_ref,
                  w3_ref, b3_ref, o_ref, h1_ref):
    f32 = jnp.float32

    # ---- conv1 (1->6, k=5): 5 banded MXU matmuls; lanes = (w_out, c_out).
    acc1 = jnp.zeros((24, 144), f32)
    for kh in range(5):
        xs = x_ref[0, kh:kh + 24, :]                                   # (24, 28)
        acc1 = acc1 + jnp.dot(xs, b1w_ref[kh], preferred_element_type=f32)
    acc1 = jnp.maximum(acc1 + b1b_ref[...], 0.0)                       # bias + ReLU

    # ---- 2x2 avg pool via two constant matmuls -> (12, 72), lanes = (w, c).
    h1 = jnp.dot(p1l_ref[...], acc1, preferred_element_type=f32)       # pool rows (H)
    h1 = jnp.dot(h1, p1r_ref[...], preferred_element_type=f32)         # pool lanes (W)
    h1_ref[...] = h1

    # ---- conv2 (6->16, k=5): 5 banded MXU matmuls; 128 output lanes (dense).
    acc2 = jnp.zeros((8, 128), f32)
    for kh in range(5):
        xs = h1_ref[kh:kh + 8, :]                                      # (8, 72)
        acc2 = acc2 + jnp.dot(xs, b2w_ref[kh], preferred_element_type=f32)
    acc2 = jnp.maximum(acc2 + b2b_ref[...], 0.0)

    # ---- 2x2 avg pool -> (4, 64), lanes = (w, c).
    h2 = jnp.dot(p2l_ref[...], acc2, preferred_element_type=f32)
    h2 = jnp.dot(h2, p2r_ref[...], preferred_element_type=f32)

    # ---- fc1 (256->120) + ReLU: weight rows pre-permuted to (h, w, c) order.
    acc3 = jnp.zeros((1, 120), f32)
    for io in range(4):
        acc3 = acc3 + jnp.dot(h2[io:io + 1, :], w3_ref[io],
                              preferred_element_type=f32)
    o_ref[0] = jnp.maximum(acc3 + b3_ref[...], 0.0)


# ----------------------------------------------------------------------------
# Wrapper-side (parameter-only) preprocessing helpers.
# ----------------------------------------------------------------------------
def _banded_weights(w, in_w, out_w):
    # w: (Cout, Cin, KH, KW).  Returns B of shape (KH, in_w*Cin, out_w*Cout)
    # with B[kh, wi*Cin+ci, j*Cout+co] = w[co, ci, kh, wi - j] if 0 <= wi-j < KW.
    cout, cin, kh, kw = w.shape
    wi = jnp.arange(in_w)[:, None]
    j = jnp.arange(out_w)[None, :]
    d = wi - j
    valid = (d >= 0) & (d < kw)
    g = w[:, :, :, jnp.clip(d, 0, kw - 1)]              # (Cout, Cin, KH, in_w, out_w)
    g = jnp.where(valid[None, None, None], g, 0.0)
    g = g.transpose(2, 3, 1, 4, 0)                       # (KH, in_w, Cin, out_w, Cout)
    return g.reshape(kh, in_w * cin, out_w * cout)


def _pool_row_mat(n_out):
    # (n_out, 2*n_out): 0.5 where input row // 2 == output row.
    i = jnp.arange(2 * n_out)[None, :]
    io = jnp.arange(n_out)[:, None]
    return 0.5 * (i // 2 == io).astype(jnp.float32)


def _pool_lane_mat(n_w_out, n_c):
    # ((2*n_w_out)*n_c, n_w_out*n_c): pools the w-part of (w, c) lanes, keeps c.
    a = 0.5 * (jnp.arange(2 * n_w_out)[:, None] // 2 ==
               jnp.arange(n_w_out)[None, :]).astype(jnp.float32)
    return jnp.kron(a, jnp.eye(n_c, dtype=jnp.float32))


# ----------------------------------------------------------------------------
# Forward pass.
# ----------------------------------------------------------------------------
def feature_extractor_forward(x, params):
    n = x.shape[0]
    xin = x.reshape(n, 28, 28)                           # NCHW with Cin=1

    # Banded conv weights (contraction over (kw, Cin)), lane-dense columns.
    b1w = _banded_weights(params["conv1_w"], 28, 24)     # (5, 28, 144)
    b1b = jnp.tile(params["conv1_b"], 24).reshape(1, 144)
    p1l = _pool_row_mat(12)                              # (12, 24)
    p1r = _pool_lane_mat(12, 6)                          # (144, 72)

    b2w = _banded_weights(params["conv2_w"], 12, 8)      # (5, 72, 128)
    b2b = jnp.tile(params["conv2_b"], 8).reshape(1, 128)
    p2l = _pool_row_mat(4)                               # (4, 8)
    p2r = _pool_lane_mat(4, 16)                          # (128, 64)

    # fc1 weight permuted so rows match the kernel's (h, w, c)-ordered lanes,
    # reproducing PyTorch's NCHW view(-1, 256).
    w3 = (params["fc1_w"].reshape(120, 16, 4, 4)
          .transpose(2, 3, 1, 0).reshape(4, 64, 120))    # (4, 64, 120)
    b3 = params["fc1_b"].reshape(1, 120)

    def bcast_spec(shape):
        nd = len(shape)
        return pl.BlockSpec(shape, lambda i, _nd=nd: (0,) * _nd)

    out = pl.pallas_call(
        _fused_kernel,
        out_shape=jax.ShapeDtypeStruct((n, 1, 120), jnp.float32),
        grid=(n,),
        in_specs=[
            pl.BlockSpec((1, 28, 28), lambda i: (i, 0, 0)),   # per-image input
            bcast_spec((5, 28, 144)), bcast_spec((1, 144)),
            bcast_spec((12, 24)), bcast_spec((144, 72)),
            bcast_spec((5, 72, 128)), bcast_spec((1, 128)),
            bcast_spec((4, 8)), bcast_spec((128, 64)),
            bcast_spec((4, 64, 120)), bcast_spec((1, 120)),
        ],
        out_specs=pl.BlockSpec((1, 1, 120), lambda i: (i, 0, 0)),
        scratch_shapes=[pltpu.VMEM((12, 72), jnp.float32)],
        compiler_params=pltpu.CompilerParams(
            dimension_semantics=("parallel",)),
    )(xin, b1w, b1b, p1l, p1r, b2w, b2b, p2l, p2r, w3, b3)
    return out.reshape(n, 120)


# ----------------------------------------------------------------------------
# Pure-JAX reference (for correctness check) and parameter init.
# ----------------------------------------------------------------------------
def _reference_forward(x, params):
    dn = ("NCHW", "OIHW", "NCHW")
    hp = lax.Precision.HIGHEST
    h = lax.conv_general_dilated(x, params["conv1_w"], (1, 1), "VALID",
                                 dimension_numbers=dn, precision=hp)
    h = jax.nn.relu(h + params["conv1_b"].reshape(1, -1, 1, 1))
    h = lax.reduce_window(h, 0.0, lax.add, (1, 1, 2, 2), (1, 1, 2, 2), "VALID") * 0.25
    h = lax.conv_general_dilated(h, params["conv2_w"], (1, 1), "VALID",
                                 dimension_numbers=dn, precision=hp)
    h = jax.nn.relu(h + params["conv2_b"].reshape(1, -1, 1, 1))
    h = lax.reduce_window(h, 0.0, lax.add, (1, 1, 2, 2), (1, 1, 2, 2), "VALID") * 0.25
    h = h.reshape(-1, 16 * 4 * 4)
    return jax.nn.relu(jnp.dot(h, params["fc1_w"].T, precision=hp) + params["fc1_b"])


def init_params(key):
    ks = jax.random.split(key, 6)

    def u(k, shape, fan_in):
        bound = 1.0 / jnp.sqrt(jnp.float32(fan_in))
        return jax.random.uniform(k, shape, jnp.float32, -bound, bound)

    return {
        "conv1_w": u(ks[0], (6, 1, 5, 5), 1 * 5 * 5),
        "conv1_b": u(ks[1], (6,), 1 * 5 * 5),
        "conv2_w": u(ks[2], (16, 6, 5, 5), 6 * 5 * 5),
        "conv2_b": u(ks[3], (16,), 6 * 5 * 5),
        "fc1_w":   u(ks[4], (120, 256), 256),     # nn.Linear(256, 120): (out, in)
        "fc1_b":   u(ks[5], (120,), 256),
    }


if __name__ == "__main__":
    key = jax.random.PRNGKey(0)
    kx, kp = jax.random.split(key)
    # Input implied by view(-1, 16*4*4) with two k=5 convs + two 2x2 pools: (N, 1, 28, 28)
    x = jax.random.normal(kx, (2, 1, 28, 28), jnp.float32)
    params = init_params(kp)

    fwd = jax.jit(feature_extractor_forward)
    out = jax.block_until_ready(fwd(x, params))
    assert out.shape == (2, 120), out.shape
    assert bool(jnp.all(out >= 0.0))  # final ReLU

    ref = jax.block_until_ready(_reference_forward(x, params))
    max_err = float(jnp.max(jnp.abs(out - ref)))
    assert max_err < 1e-2, f"max |err| = {max_err}"
    print("KERNEL_OK")
</pallas_src>

<mosaic_0001>
module attributes {stable_mosaic.version = 11 : i64} {
  func.func @_fused_kernel(%arg0: i32, %arg1: memref<1x28x28xf32, #tpu.memory_space<vmem>>, %arg2: memref<5x28x144xf32, #tpu.memory_space<vmem>>, %arg3: memref<1x144xf32, #tpu.memory_space<vmem>>, %arg4: memref<12x24xf32, #tpu.memory_space<vmem>>, %arg5: memref<144x72xf32, #tpu.memory_space<vmem>>, %arg6: memref<5x72x128xf32, #tpu.memory_space<vmem>>, %arg7: memref<1x128xf32, #tpu.memory_space<vmem>>, %arg8: memref<4x8xf32, #tpu.memory_space<vmem>>, %arg9: memref<128x64xf32, #tpu.memory_space<vmem>>, %arg10: memref<4x64x120xf32, #tpu.memory_space<vmem>>, %arg11: memref<1x120xf32, #tpu.memory_space<vmem>>, %arg12: memref<1x1x120xf32, #tpu.memory_space<vmem>>, %arg13: memref<12x72xf32, #tpu.memory_space<vmem>>) attributes {dimension_semantics = [#tpu.dimension_semantics<parallel>], iteration_bounds = array<i64: 2>, scalar_prefetch = 0 : i64, scratch_operands = 1 : i64, tpu.core_type = #tpu.core_type<tc>, window_params = [{transform_indices = @transform_0, window_bounds = array<i64: 1, 28, 28>}, {pipeline_mode = #tpu.pipeline_mode<synchronous>, transform_indices = @transform_1, window_bounds = array<i64: 5, 28, 144>}, {pipeline_mode = #tpu.pipeline_mode<synchronous>, transform_indices = @transform_2, window_bounds = array<i64: 1, 144>}, {pipeline_mode = #tpu.pipeline_mode<synchronous>, transform_indices = @transform_3, window_bounds = array<i64: 12, 24>}, {pipeline_mode = #tpu.pipeline_mode<synchronous>, transform_indices = @transform_4, window_bounds = array<i64: 144, 72>}, {pipeline_mode = #tpu.pipeline_mode<synchronous>, transform_indices = @transform_5, window_bounds = array<i64: 5, 72, 128>}, {pipeline_mode = #tpu.pipeline_mode<synchronous>, transform_indices = @transform_6, window_bounds = array<i64: 1, 128>}, {pipeline_mode = #tpu.pipeline_mode<synchronous>, transform_indices = @transform_7, window_bounds = array<i64: 4, 8>}, {pipeline_mode = #tpu.pipeline_mode<synchronous>, transform_indices = @transform_8, window_bounds = array<i64: 128, 64>}, {pipeline_mode = #tpu.pipeline_mode<synchronous>, transform_indices = @transform_9, window_bounds = array<i64: 4, 64, 120>}, {pipeline_mode = #tpu.pipeline_mode<synchronous>, transform_indices = @transform_10, window_bounds = array<i64: 1, 120>}, {transform_indices = @transform_11, window_bounds = array<i64: 1, 1, 120>}]} {
    %cst = arith.constant 0.000000e+00 : f32
    %0 = vector.broadcast %cst : f32 to vector<24x144xf32>
    %c0 = arith.constant 0 : index
    %c0_0 = arith.constant 0 : index
    %c0_1 = arith.constant 0 : index
    %1 = vector.load %arg1[%c0, %c0_0, %c0_1] : memref<1x28x28xf32, #tpu.memory_space<vmem>>, vector<1x24x28xf32>
    %2 = vector.shape_cast %1 : vector<1x24x28xf32> to vector<24x28xf32>
    %c0_2 = arith.constant 0 : index
    %c0_3 = arith.constant 0 : index
    %c0_4 = arith.constant 0 : index
    %3 = vector.load %arg2[%c0_2, %c0_3, %c0_4] : memref<5x28x144xf32, #tpu.memory_space<vmem>>, vector<1x28x144xf32>
    %4 = vector.shape_cast %3 : vector<1x28x144xf32> to vector<28x144xf32>
    %cst_5 = arith.constant dense<0.000000e+00> : vector<24x144xf32>
    %5 = tpu.matmul %2, %4, %cst_5 {dimension_numbers = #tpu.dot_dimension_numbers<[1], [0], [0], [1], [0, 0, 1, 1], [], []>} : vector<24x28xf32>, vector<28x144xf32>, vector<24x144xf32> -> vector<24x144xf32>
    %6 = arith.addf %0, %5 : vector<24x144xf32>
    %c0_6 = arith.constant 0 : index
    %c1 = arith.constant 1 : index
    %c0_7 = arith.constant 0 : index
    %7 = vector.load %arg1[%c0_6, %c1, %c0_7] : memref<1x28x28xf32, #tpu.memory_space<vmem>>, vector<1x24x28xf32>
    %8 = vector.shape_cast %7 : vector<1x24x28xf32> to vector<24x28xf32>
    %c1_8 = arith.constant 1 : index
    %c0_9 = arith.constant 0 : index
    %c0_10 = arith.constant 0 : index
    %9 = vector.load %arg2[%c1_8, %c0_9, %c0_10] : memref<5x28x144xf32, #tpu.memory_space<vmem>>, vector<1x28x144xf32>
    %10 = vector.shape_cast %9 : vector<1x28x144xf32> to vector<28x144xf32>
    %cst_11 = arith.constant dense<0.000000e+00> : vector<24x144xf32>
    %11 = tpu.matmul %8, %10, %cst_11 {dimension_numbers = #tpu.dot_dimension_numbers<[1], [0], [0], [1], [0, 0, 1, 1], [], []>} : vector<24x28xf32>, vector<28x144xf32>, vector<24x144xf32> -> vector<24x144xf32>
    %12 = arith.addf %6, %11 : vector<24x144xf32>
    %c0_12 = arith.constant 0 : index
    %c2 = arith.constant 2 : index
    %c0_13 = arith.constant 0 : index
    %13 = vector.load %arg1[%c0_12, %c2, %c0_13] : memref<1x28x28xf32, #tpu.memory_space<vmem>>, vector<1x24x28xf32>
    %14 = vector.shape_cast %13 : vector<1x24x28xf32> to vector<24x28xf32>
    %c2_14 = arith.constant 2 : index
    %c0_15 = arith.constant 0 : index
    %c0_16 = arith.constant 0 : index
    %15 = vector.load %arg2[%c2_14, %c0_15, %c0_16] : memref<5x28x144xf32, #tpu.memory_space<vmem>>, vector<1x28x144xf32>
    %16 = vector.shape_cast %15 : vector<1x28x144xf32> to vector<28x144xf32>
    %cst_17 = arith.constant dense<0.000000e+00> : vector<24x144xf32>
    %17 = tpu.matmul %14, %16, %cst_17 {dimension_numbers = #tpu.dot_dimension_numbers<[1], [0], [0], [1], [0, 0, 1, 1], [], []>} : vector<24x28xf32>, vector<28x144xf32>, vector<24x144xf32> -> vector<24x144xf32>
    %18 = arith.addf %12, %17 : vector<24x144xf32>
    %c0_18 = arith.constant 0 : index
    %c3 = arith.constant 3 : index
    %c0_19 = arith.constant 0 : index
    %19 = vector.load %arg1[%c0_18, %c3, %c0_19] : memref<1x28x28xf32, #tpu.memory_space<vmem>>, vector<1x24x28xf32>
    %20 = vector.shape_cast %19 : vector<1x24x28xf32> to vector<24x28xf32>
    %c3_20 = arith.constant 3 : index
    %c0_21 = arith.constant 0 : index
    %c0_22 = arith.constant 0 : index
    %21 = vector.load %arg2[%c3_20, %c0_21, %c0_22] : memref<5x28x144xf32, #tpu.memory_space<vmem>>, vector<1x28x144xf32>
    %22 = vector.shape_cast %21 : vector<1x28x144xf32> to vector<28x144xf32>
    %cst_23 = arith.constant dense<0.000000e+00> : vector<24x144xf32>
    %23 = tpu.matmul %20, %22, %cst_23 {dimension_numbers = #tpu.dot_dimension_numbers<[1], [0], [0], [1], [0, 0, 1, 1], [], []>} : vector<24x28xf32>, vector<28x144xf32>, vector<24x144xf32> -> vector<24x144xf32>
    %24 = arith.addf %18, %23 : vector<24x144xf32>
    %c0_24 = arith.constant 0 : index
    %c4 = arith.constant 4 : index
    %c0_25 = arith.constant 0 : index
    %25 = vector.load %arg1[%c0_24, %c4, %c0_25] : memref<1x28x28xf32, #tpu.memory_space<vmem>>, vector<1x24x28xf32>
    %26 = vector.shape_cast %25 : vector<1x24x28xf32> to vector<24x28xf32>
    %c4_26 = arith.constant 4 : index
    %c0_27 = arith.constant 0 : index
    %c0_28 = arith.constant 0 : index
    %27 = vector.load %arg2[%c4_26, %c0_27, %c0_28] : memref<5x28x144xf32, #tpu.memory_space<vmem>>, vector<1x28x144xf32>
    %28 = vector.shape_cast %27 : vector<1x28x144xf32> to vector<28x144xf32>
    %cst_29 = arith.constant dense<0.000000e+00> : vector<24x144xf32>
    %29 = tpu.matmul %26, %28, %cst_29 {dimension_numbers = #tpu.dot_dimension_numbers<[1], [0], [0], [1], [0, 0, 1, 1], [], []>} : vector<24x28xf32>, vector<28x144xf32>, vector<24x144xf32> -> vector<24x144xf32>
    %30 = arith.addf %24, %29 : vector<24x144xf32>
    %c0_30 = arith.constant 0 : index
    %c0_31 = arith.constant 0 : index
    %31 = vector.load %arg3[%c0_30, %c0_31] : memref<1x144xf32, #tpu.memory_space<vmem>>, vector<1x144xf32>
    %32 = vector.broadcast %31 : vector<1x144xf32> to vector<24x144xf32>
    %33 = arith.addf %30, %32 : vector<24x144xf32>
    %cst_32 = arith.constant 0.000000e+00 : f32
    %34 = vector.broadcast %cst_32 : f32 to vector<24x144xf32>
    %35 = arith.maximumf %33, %34 : vector<24x144xf32>
    %c0_33 = arith.constant 0 : index
    %c0_34 = arith.constant 0 : index
    %36 = vector.load %arg4[%c0_33, %c0_34] : memref<12x24xf32, #tpu.memory_space<vmem>>, vector<12x24xf32>
    %cst_35 = arith.constant dense<0.000000e+00> : vector<12x144xf32>
    %37 = tpu.matmul %36, %35, %cst_35 {dimension_numbers = #tpu.dot_dimension_numbers<[1], [0], [0], [1], [0, 0, 1, 1], [], []>} : vector<12x24xf32>, vector<24x144xf32>, vector<12x144xf32> -> vector<12x144xf32>
    %c0_36 = arith.constant 0 : index
    %c0_37 = arith.constant 0 : index
    %38 = vector.load %arg5[%c0_36, %c0_37] : memref<144x72xf32, #tpu.memory_space<vmem>>, vector<144x72xf32>
    %cst_38 = arith.constant dense<0.000000e+00> : vector<12x72xf32>
    %39 = tpu.matmul %37, %38, %cst_38 {dimension_numbers = #tpu.dot_dimension_numbers<[1], [0], [0], [1], [0, 0, 1, 1], [], []>} : vector<12x144xf32>, vector<144x72xf32>, vector<12x72xf32> -> vector<12x72xf32>
    %c0_39 = arith.constant 0 : index
    %c0_40 = arith.constant 0 : index
    %40 = vector.load %arg13[%c0_39, %c0_40] : memref<12x72xf32, #tpu.memory_space<vmem>>, vector<12x72xf32>
    tpu.vector_store %arg13[%c0_39, %c0_40], %39 {strides = array<i32>} : memref<12x72xf32, #tpu.memory_space<vmem>>, vector<12x72xf32>,
    %cst_41 = arith.constant 0.000000e+00 : f32
    %41 = vector.broadcast %cst_41 : f32 to vector<8x128xf32>
    %c0_42 = arith.constant 0 : index
    %c0_43 = arith.constant 0 : index
    %42 = vector.load %arg13[%c0_42, %c0_43] : memref<12x72xf32, #tpu.memory_space<vmem>>, vector<8x72xf32>
    %c0_44 = arith.constant 0 : index
    %c0_45 = arith.constant 0 : index
    %c0_46 = arith.constant 0 : index
    %43 = vector.load %arg6[%c0_44, %c0_45, %c0_46] : memref<5x72x128xf32, #tpu.memory_space<vmem>>, vector<1x72x128xf32>
    %44 = vector.shape_cast %43 : vector<1x72x128xf32> to vector<72x128xf32>
    %cst_47 = arith.constant dense<0.000000e+00> : vector<8x128xf32>
    %45 = tpu.matmul %42, %44, %cst_47 {dimension_numbers = #tpu.dot_dimension_numbers<[1], [0], [0], [1], [0, 0, 1, 1], [], []>} : vector<8x72xf32>, vector<72x128xf32>, vector<8x128xf32> -> vector<8x128xf32>
    %46 = arith.addf %41, %45 : vector<8x128xf32>
    %c1_48 = arith.constant 1 : index
    %c0_49 = arith.constant 0 : index
    %47 = vector.load %arg13[%c1_48, %c0_49] : memref<12x72xf32, #tpu.memory_space<vmem>>, vector<8x72xf32>
    %c1_50 = arith.constant 1 : index
    %c0_51 = arith.constant 0 : index
    %c0_52 = arith.constant 0 : index
    %48 = vector.load %arg6[%c1_50, %c0_51, %c0_52] : memref<5x72x128xf32, #tpu.memory_space<vmem>>, vector<1x72x128xf32>
    %49 = vector.shape_cast %48 : vector<1x72x128xf32> to vector<72x128xf32>
    %cst_53 = arith.constant dense<0.000000e+00> : vector<8x128xf32>
    %50 = tpu.matmul %47, %49, %cst_53 {dimension_numbers = #tpu.dot_dimension_numbers<[1], [0], [0], [1], [0, 0, 1, 1], [], []>} : vector<8x72xf32>, vector<72x128xf32>, vector<8x128xf32> -> vector<8x128xf32>
    %51 = arith.addf %46, %50 : vector<8x128xf32>
    %c2_54 = arith.constant 2 : index
    %c0_55 = arith.constant 0 : index
    %52 = vector.load %arg13[%c2_54, %c0_55] : memref<12x72xf32, #tpu.memory_space<vmem>>, vector<8x72xf32>
    %c2_56 = arith.constant 2 : index
    %c0_57 = arith.constant 0 : index
    %c0_58 = arith.constant 0 : index
    %53 = vector.load %arg6[%c2_56, %c0_57, %c0_58] : memref<5x72x128xf32, #tpu.memory_space<vmem>>, vector<1x72x128xf32>
    %54 = vector.shape_cast %53 : vector<1x72x128xf32> to vector<72x128xf32>
    %cst_59 = arith.constant dense<0.000000e+00> : vector<8x128xf32>
    %55 = tpu.matmul %52, %54, %cst_59 {dimension_numbers = #tpu.dot_dimension_numbers<[1], [0], [0], [1], [0, 0, 1, 1], [], []>} : vector<8x72xf32>, vector<72x128xf32>, vector<8x128xf32> -> vector<8x128xf32>
    %56 = arith.addf %51, %55 : vector<8x128xf32>
    %c3_60 = arith.constant 3 : index
    %c0_61 = arith.constant 0 : index
    %57 = vector.load %arg13[%c3_60, %c0_61] : memref<12x72xf32, #tpu.memory_space<vmem>>, vector<8x72xf32>
    %c3_62 = arith.constant 3 : index
    %c0_63 = arith.constant 0 : index
    %c0_64 = arith.constant 0 : index
    %58 = vector.load %arg6[%c3_62, %c0_63, %c0_64] : memref<5x72x128xf32, #tpu.memory_space<vmem>>, vector<1x72x128xf32>
    %59 = vector.shape_cast %58 : vector<1x72x128xf32> to vector<72x128xf32>
    %cst_65 = arith.constant dense<0.000000e+00> : vector<8x128xf32>
    %60 = tpu.matmul %57, %59, %cst_65 {dimension_numbers = #tpu.dot_dimension_numbers<[1], [0], [0], [1], [0, 0, 1, 1], [], []>} : vector<8x72xf32>, vector<72x128xf32>, vector<8x128xf32> -> vector<8x128xf32>
    %61 = arith.addf %56, %60 : vector<8x128xf32>
    %c4_66 = arith.constant 4 : index
    %c0_67 = arith.constant 0 : index
    %62 = vector.load %arg13[%c4_66, %c0_67] : memref<12x72xf32, #tpu.memory_space<vmem>>, vector<8x72xf32>
    %c4_68 = arith.constant 4 : index
    %c0_69 = arith.constant 0 : index
    %c0_70 = arith.constant 0 : index
    %63 = vector.load %arg6[%c4_68, %c0_69, %c0_70] : memref<5x72x128xf32, #tpu.memory_space<vmem>>, vector<1x72x128xf32>
    %64 = vector.shape_cast %63 : vector<1x72x128xf32> to vector<72x128xf32>
    %cst_71 = arith.constant dense<0.000000e+00> : vector<8x128xf32>
    %65 = tpu.matmul %62, %64, %cst_71 {dimension_numbers = #tpu.dot_dimension_numbers<[1], [0], [0], [1], [0, 0, 1, 1], [], []>} : vector<8x72xf32>, vector<72x128xf32>, vector<8x128xf32> -> vector<8x128xf32>
    %66 = arith.addf %61, %65 : vector<8x128xf32>
    %c0_72 = arith.constant 0 : index
    %c0_73 = arith.constant 0 : index
    %67 = vector.load %arg7[%c0_72, %c0_73] : memref<1x128xf32, #tpu.memory_space<vmem>>, vector<1x128xf32>
    %68 = vector.broadcast %67 : vector<1x128xf32> to vector<8x128xf32>
    %69 = arith.addf %66, %68 : vector<8x128xf32>
    %cst_74 = arith.constant 0.000000e+00 : f32
    %70 = vector.broadcast %cst_74 : f32 to vector<8x128xf32>
    %71 = arith.maximumf %69, %70 : vector<8x128xf32>
    %c0_75 = arith.constant 0 : index
    %c0_76 = arith.constant 0 : index
    %72 = vector.load %arg8[%c0_75, %c0_76] : memref<4x8xf32, #tpu.memory_space<vmem>>, vector<4x8xf32>
    %cst_77 = arith.constant dense<0.000000e+00> : vector<4x128xf32>
    %73 = tpu.matmul %72, %71, %cst_77 {dimension_numbers = #tpu.dot_dimension_numbers<[1], [0], [0], [1], [0, 0, 1, 1], [], []>} : vector<4x8xf32>, vector<8x128xf32>, vector<4x128xf32> -> vector<4x128xf32>
    %c0_78 = arith.constant 0 : index
    %c0_79 = arith.constant 0 : index
    %74 = vector.load %arg9[%c0_78, %c0_79] : memref<128x64xf32, #tpu.memory_space<vmem>>, vector<128x64xf32>
    %cst_80 = arith.constant dense<0.000000e+00> : vector<4x64xf32>
    %75 = tpu.matmul %73, %74, %cst_80 {dimension_numbers = #tpu.dot_dimension_numbers<[1], [0], [0], [1], [0, 0, 1, 1], [], []>} : vector<4x128xf32>, vector<128x64xf32>, vector<4x64xf32> -> vector<4x64xf32>
    %cst_81 = arith.constant 0.000000e+00 : f32
    %76 = vector.broadcast %cst_81 : f32 to vector<1x120xf32>
    %77 = vector.extract_strided_slice %75 {offsets = [0, 0], sizes = [1, 64], strides = [1, 1]} : vector<4x64xf32> to vector<1x64xf32>
    %c0_82 = arith.constant 0 : index
    %c0_83 = arith.constant 0 : index
    %c0_84 = arith.constant 0 : index
    %78 = vector.load %arg10[%c0_82, %c0_83, %c0_84] : memref<4x64x120xf32, #tpu.memory_space<vmem>>, vector<1x64x120xf32>
    %79 = vector.shape_cast %78 : vector<1x64x120xf32> to vector<64x120xf32>
    %cst_85 = arith.constant dense<0.000000e+00> : vector<1x120xf32>
    %80 = tpu.matmul %77, %79, %cst_85 {dimension_numbers = #tpu.dot_dimension_numbers<[1], [0], [0], [1], [0, 0, 1, 1], [], []>} : vector<1x64xf32>, vector<64x120xf32>, vector<1x120xf32> -> vector<1x120xf32>
    %81 = arith.addf %76, %80 : vector<1x120xf32>
    %82 = vector.extract_strided_slice %75 {offsets = [1, 0], sizes = [1, 64], strides = [1, 1]} : vector<4x64xf32> to vector<1x64xf32>
    %c1_86 = arith.constant 1 : index
    %c0_87 = arith.constant 0 : index
    %c0_88 = arith.constant 0 : index
    %83 = vector.load %arg10[%c1_86, %c0_87, %c0_88] : memref<4x64x120xf32, #tpu.memory_space<vmem>>, vector<1x64x120xf32>
    %84 = vector.shape_cast %83 : vector<1x64x120xf32> to vector<64x120xf32>
    %cst_89 = arith.constant dense<0.000000e+00> : vector<1x120xf32>
    %85 = tpu.matmul %82, %84, %cst_89 {dimension_numbers = #tpu.dot_dimension_numbers<[1], [0], [0], [1], [0, 0, 1, 1], [], []>} : vector<1x64xf32>, vector<64x120xf32>, vector<1x120xf32> -> vector<1x120xf32>
    %86 = arith.addf %81, %85 : vector<1x120xf32>
    %87 = vector.extract_strided_slice %75 {offsets = [2, 0], sizes = [1, 64], strides = [1, 1]} : vector<4x64xf32> to vector<1x64xf32>
    %c2_90 = arith.constant 2 : index
    %c0_91 = arith.constant 0 : index
    %c0_92 = arith.constant 0 : index
    %88 = vector.load %arg10[%c2_90, %c0_91, %c0_92] : memref<4x64x120xf32, #tpu.memory_space<vmem>>, vector<1x64x120xf32>
    %89 = vector.shape_cast %88 : vector<1x64x120xf32> to vector<64x120xf32>
    %cst_93 = arith.constant dense<0.000000e+00> : vector<1x120xf32>
    %90 = tpu.matmul %87, %89, %cst_93 {dimension_numbers = #tpu.dot_dimension_numbers<[1], [0], [0], [1], [0, 0, 1, 1], [], []>} : vector<1x64xf32>, vector<64x120xf32>, vector<1x120xf32> -> vector<1x120xf32>
    %91 = arith.addf %86, %90 : vector<1x120xf32>
    %92 = vector.extract_strided_slice %75 {offsets = [3, 0], sizes = [1, 64], strides = [1, 1]} : vector<4x64xf32> to vector<1x64xf32>
    %c3_94 = arith.constant 3 : index
    %c0_95 = arith.constant 0 : index
    %c0_96 = arith.constant 0 : index
    %93 = vector.load %arg10[%c3_94, %c0_95, %c0_96] : memref<4x64x120xf32, #tpu.memory_space<vmem>>, vector<1x64x120xf32>
    %94 = vector.shape_cast %93 : vector<1x64x120xf32> to vector<64x120xf32>
    %cst_97 = arith.constant dense<0.000000e+00> : vector<1x120xf32>
    %95 = tpu.matmul %92, %94, %cst_97 {dimension_numbers = #tpu.dot_dimension_numbers<[1], [0], [0], [1], [0, 0, 1, 1], [], []>} : vector<1x64xf32>, vector<64x120xf32>, vector<1x120xf32> -> vector<1x120xf32>
    %96 = arith.addf %91, %95 : vector<1x120xf32>
    %c0_98 = arith.constant 0 : index
    %c0_99 = arith.constant 0 : index
    %97 = vector.load %arg11[%c0_98, %c0_99] : memref<1x120xf32, #tpu.memory_space<vmem>>, vector<1x120xf32>
    %98 = arith.addf %96, %97 : vector<1x120xf32>
    %cst_100 = arith.constant 0.000000e+00 : f32
    %99 = vector.broadcast %cst_100 : f32 to vector<1x120xf32>
    %100 = arith.maximumf %98, %99 : vector<1x120xf32>
    %c0_101 = arith.constant 0 : index
    %c0_102 = arith.constant 0 : index
    %c0_103 = arith.constant 0 : index
    %101 = vector.load %arg12[%c0_101, %c0_102, %c0_103] : memref<1x1x120xf32, #tpu.memory_space<vmem>>, vector<1x1x120xf32>
    %102 = vector.shape_cast %101 : vector<1x1x120xf32> to vector<1x120xf32>
    %103 = vector.shape_cast %100 : vector<1x120xf32> to vector<1x1x120xf32>
    tpu.vector_store %arg12[%c0_101, %c0_102, %c0_103], %103 {strides = array<i32>} : memref<1x1x120xf32, #tpu.memory_space<vmem>>, vector<1x1x120xf32>,
    return
  }
  func.func @transform_0(%arg0: i32) -> (i32, i32, i32) {
    %c0_i32 = arith.constant 0 : i32
    %c0_i32_0 = arith.constant 0 : i32
    %c0_i32_1 = arith.constant 0 : i32
    return %arg0, %c0_i32, %c0_i32_0 : i32, i32, i32
  }
  func.func @transform_1(%arg0: i32) -> (i32, i32, i32) {
    %c0_i32 = arith.constant 0 : i32
    %c0_i32_0 = arith.constant 0 : i32
    %c0_i32_1 = arith.constant 0 : i32
    %c0_i32_2 = arith.constant 0 : i32
    return %c0_i32, %c0_i32_0, %c0_i32_1 : i32, i32, i32
  }
  func.func @transform_2(%arg0: i32) -> (i32, i32) {
    %c0_i32 = arith.constant 0 : i32
    %c0_i32_0 = arith.constant 0 : i32
    %c0_i32_1 = arith.constant 0 : i32
    return %c0_i32, %c0_i32_0 : i32, i32
  }
  func.func @transform_3(%arg0: i32) -> (i32, i32) {
    %c0_i32 = arith.constant 0 : i32
    %c0_i32_0 = arith.constant 0 : i32
    %c0_i32_1 = arith.constant 0 : i32
    return %c0_i32, %c0_i32_0 : i32, i32
  }
  func.func @transform_4(%arg0: i32) -> (i32, i32) {
    %c0_i32 = arith.constant 0 : i32
    %c0_i32_0 = arith.constant 0 : i32
    %c0_i32_1 = arith.constant 0 : i32
    return %c0_i32, %c0_i32_0 : i32, i32
  }
  func.func @transform_5(%arg0: i32) -> (i32, i32, i32) {
    %c0_i32 = arith.constant 0 : i32
    %c0_i32_0 = arith.constant 0 : i32
    %c0_i32_1 = arith.constant 0 : i32
    %c0_i32_2 = arith.constant 0 : i32
    return %c0_i32, %c0_i32_0, %c0_i32_1 : i32, i32, i32
  }
  func.func @transform_6(%arg0: i32) -> (i32, i32) {
    %c0_i32 = arith.constant 0 : i32
    %c0_i32_0 = arith.constant 0 : i32
    %c0_i32_1 = arith.constant 0 : i32
    return %c0_i32, %c0_i32_0 : i32, i32
  }
  func.func @transform_7(%arg0: i32) -> (i32, i32) {
    %c0_i32 = arith.constant 0 : i32
    %c0_i32_0 = arith.constant 0 : i32
    %c0_i32_1 = arith.constant 0 : i32
    return %c0_i32, %c0_i32_0 : i32, i32
  }
  func.func @transform_8(%arg0: i32) -> (i32, i32) {
    %c0_i32 = arith.constant 0 : i32
    %c0_i32_0 = arith.constant 0 : i32
    %c0_i32_1 = arith.constant 0 : i32
    return %c0_i32, %c0_i32_0 : i32, i32
  }
  func.func @transform_9(%arg0: i32) -> (i32, i32, i32) {
    %c0_i32 = arith.constant 0 : i32
    %c0_i32_0 = arith.constant 0 : i32
    %c0_i32_1 = arith.constant 0 : i32
    %c0_i32_2 = arith.constant 0 : i32
    return %c0_i32, %c0_i32_0, %c0_i32_1 : i32, i32, i32
  }
  func.func @transform_10(%arg0: i32) -> (i32, i32) {
    %c0_i32 = arith.constant 0 : i32
    %c0_i32_0 = arith.constant 0 : i32
    %c0_i32_1 = arith.constant 0 : i32
    return %c0_i32, %c0_i32_0 : i32, i32
  }
  func.func @transform_11(%arg0: i32) -> (i32, i32, i32) {
    %c0_i32 = arith.constant 0 : i32
    %c0_i32_0 = arith.constant 0 : i32
    %c0_i32_1 = arith.constant 0 : i32
    return %arg0, %c0_i32, %c0_i32_0 : i32, i32, i32
  }
}

</mosaic_0001>

<bundles_post_ra>
// kernel: tile.13
= control target key start
LH: loop header
LB: loop body
LE: loop exit
PB: predicated region body
PF: predicated region fallthrough
CT: control target
= control target key end

     0   :  { %s34_s0 = inlined_call_operand.vmem [shape: f32[6], index: 0, kind: input, shape index: {}]   ;;  %s35_s1 = inlined_call_operand.vmem [shape: f32[24,6], index: 1, kind: output, shape index: {}]  }
   0x1   :  { %v4_v0 = vld [vmem:[%s34_s0] ss:$0 sm:$0xff] }
   0x2   :  { %5 = vst [vmem:[%s35_s1] sm:$0xff] %v4_v0  ;;  %10 = vst [vmem:[%s35_s1 + $0x8] sm:$0xff] %v4_v0 }
   0x3   :  { %11 = vst [vmem:[%s35_s1 + $0x10] sm:$0xff] %v4_v0 }

// kernel: tile.14
= control target key start
LH: loop header
LB: loop body
LE: loop exit
PB: predicated region body
PF: predicated region fallthrough
CT: control target
= control target key end

     0   :  { %vm9_vm0 = vcmask 15360   ;;  %s211_s12 = smov 126   ;;  %s212_s13 = smov 114   ;;  %vm3_vm1 = vcmask 48128   ;;  %vm13_vm2 = vcmask 31744   ;;  %vm16_vm3 = vcmask 1048560   ;;  %s325_s0 = inlined_call_operand.vmem [shape: f32[24,6], index: 0, kind: input, shape index: {}]   ;;  %s326_s1 = inlined_call_operand.vmem [shape: f32[1,144], index: 1, kind: output, shape index: {}]  }
   0x1   :  { %v163_v0 = vld [vmem:[%s325_s0 + $0x15] sm:$0x1]   ;;  %v166_v3 = vld [vmem:[%s325_s0 + $0x13] sm:$0x1]   ;;  %v165_v4 = vld [vmem:[%s325_s0 + $0x14] sm:$0x1]  }
   0x2   :  { %v164_v1 = vld [vmem:[%s325_s0 + $0x15] sm:$0x1]   ;;  %26 = vrot.lane.b32.xlu1 %v166_v3, %s212_s13  ;;  %v167_v5 = vld [vmem:[%s325_s0 + $0x12] sm:$0x1]   ;;  %s213_s18 = smov 120   ;;  %s214_s19 = smov 108  }
   0x3   :  { %v10_v2 = vsel %vm9_vm0, %v164_v1, %v163_v0  ;;  %v168_v6 = vld [vmem:[%s325_s0 + $0x11] sm:$0x1]   ;;  %v169_v7 = vld [vmem:[%s325_s0 + $0x10] sm:$0x1]   ;;  %s215_s24 = smov 102   ;;  %s216_s25 = smov 96  }
   0x4   :  { %11 = vrot.lane.b32.xlu0 %v10_v2, %s211_s12  ;;  %v170_v8 = vld [vmem:[%s325_s0 + $0xf] sm:$0x1]   ;;  %v171_v9 = vld [vmem:[%s325_s0 + $0xe] sm:$0x1]   ;;  %v2_v10 = vld [vmem:[%s325_s0] sm:$0x1]  }
   0x5   :  { %4 = vst.msk [vmem:[#allocation0] sm:$0x1] %vm3_vm1, %v2_v10   ;;  %s217_s3 = smov 90   ;;  %s218_s4 = smov 84   ;;  %v172_v11 = vld [vmem:[%s325_s0 + $0xd] sm:$0x1]  }
   0x6   :  { %32 = vrot.lane.b32.xlu1 %v167_v5, %s214_s19  ;;  %v173_v12 = vld [vmem:[%s325_s0 + $0xc] sm:$0x1]   ;;  %s219_s9 = smov 78   ;;  %s220_s10 = smov 72   ;;  %v174_v13 = vld [vmem:[%s325_s0 + $0xb] sm:$0x1]  }
   0x7   :  { %v175_v14 = vld [vmem:[%s325_s0 + $0xa] sm:$0x1]   ;;  %s221_s15 = smov 66   ;;  %s222_s16 = smov 60   ;;  %v176_v15 = vld [vmem:[%s325_s0 + $0x9] sm:$0x1]  }
   0x8   :  { %20 = vrot.lane.b32.xlu0 %v165_v4, %s213_s18  ;;  %v177_v16 = vld [vmem:[%s325_s0 + $0x8] sm:$0x1]   ;;  %s223_s21 = smov 54   ;;  %s224_s22 = smov 48   ;;  %v178_v17 = vld [vmem:[%s325_s0 + $0x7] sm:$0x1]  }
   0x9   :  { %v179_v18 = vld [vmem:[%s325_s0 + $0x6] sm:$0x1]   ;;  %s225_s27 = smov 42   ;;  %s226_s28 = smov 36   ;;  %v180_v19 = vld [vmem:[%s325_s0 + $0x5] sm:$0x1]  }
   0xa   :  { %44 = vrot.lane.b32.xlu1 %v169_v7, %s216_s25  ;;  %v181_v20 = vld [vmem:[%s325_s0 + $0x4] sm:$0x1]   ;;  %s228_s5 = smov 24   ;;  %v182_v21 = vld [vmem:[%s325_s0 + $0x3] sm:$0x1]   ;;  %s230_s11 = smov 12  }
   0xb   :  { %v183_v22 = vld [vmem:[%s325_s0 + $0x2] sm:$0x1]   ;;  %v184_v23 = vld [vmem:[%s325_s0 + $0x17] sm:$0x1]   ;;  %v185_v24 = vld [vmem:[%s325_s0 + $0x1] sm:$0x1]  }
   0xc   :  { %38 = vrot.lane.b32.xlu0 %v168_v6, %s215_s24  ;;  %s232_s17 = smov 6   ;;  %v186_v25 = vld [vmem:[%s325_s0 + $0x16] sm:$0x1]   ;;  %s233_s0 = smov 4   ;;  %vm22_vm4 = vcmask 1032128   ;;  %vm28_vm5 = vcmask 982928  }
   0xd   :  { %vm34_vm6 = vcmask 933728   ;;  %vm40_vm7 = vcmask 884528   ;;  %vm46_vm8 = vcmask 835328   ;;  %vm52_vm9 = vcmask 786128  }
   0xe   :  { %56 = vrot.lane.b32.xlu1 %v171_v9, %s218_s4  ;;  %s227_s4 = smov 30   ;;  %vm58_vm10 = vcmask 736928   ;;  %vm64_vm11 = vcmask 687728   ;;  %vm70_vm12 = vcmask 638528   ;;  %vm76_vm13 = vcmask 589328  }
   0xf   :  { %vm82_vm14 = vcmask 540128   ;;  %vm88_vm15 = vcmask 490928   ;;  %vm94_vm0 = vcmask 441728   ;;  %vm100_vm1 = vcmask 392528  }
  0x10   :  { %50 = vrot.lane.b32.xlu0 %v170_v8, %s217_s3 }
  0x12   :  { %68 = vrot.lane.b32.xlu1 %v173_v12, %s220_s10  ;;  %s229_s10 = smov 18  }
  0x14   :  { %62 = vrot.lane.b32.xlu0 %v172_v11, %s219_s9 }
  0x16   :  { %80 = vrot.lane.b32.xlu1 %v175_v14, %s222_s16  ;;  %s231_s16 = smov 10  }
  0x18   :  { %74 = vrot.lane.b32.xlu0 %v174_v13, %s221_s15 }
  0x1a   :  { %92 = vrot.lane.b32.xlu1 %v177_v16, %s224_s22 }
  0x1c   :  { %86 = vrot.lane.b32.xlu0 %v176_v15, %s223_s21 }
  0x1e   :  { %104 = vrot.lane.b32.xlu1 %v179_v18, %s226_s28 }
  0x20   :  { %98 = vrot.lane.b32.xlu0 %v178_v17, %s225_s27 }
  0x22   :  { %116 = vrot.lane.b32.xlu1 %v181_v20, %s228_s5 }
  0x24   :  { %110 = vrot.lane.b32.xlu0 %v180_v19, %s227_s4 }
  0x26   :  { %128 = vrot.lane.b32.xlu1 %v183_v22, %s230_s11 }
  0x28   :  { %122 = vrot.lane.b32.xlu0 %v182_v21, %s229_s10 }
  0x2a   :  { %141 = vrot.lane.b32.xlu1 %v185_v24, %s232_s17 }
  0x2c   :  { %134 = vrot.lane.b32.xlu0 %v184_v23, %s231_s16 }
  0x30   :  { %147 = vrot.lane.b32.xlu0 %v186_v25, %s233_s0 }
  0x74   :  { %v27_v27 = vpop.permute.xlu1 %26  }
  0x76   :  { %v12_v26 = vpop.permute.xlu0 %11  }
  0x77   :  { %15 = vst.msk [vmem:[#allocation0 + $0x8] sm:$0x1] %vm13_vm2, %v12_v26   ;;  %vm106_vm2 = vcmask 343328  }
  0x78   :  { %17 = vst.msk [vmem:[#allocation0] sm:$0x1] %vm16_vm3, %v12_v26   ;;  %v33_v29 = vpop.permute.xlu1 %32   ;;  %vm112_vm3 = vcmask 294128  }
  0x7a   :  { %v21_v28 = vpop.permute.xlu0 %20  }
  0x7b   :  { %23 = vst.msk [vmem:[#allocation0] sm:$0x1] %vm22_vm4, %v21_v28   ;;  %vm118_vm4 = vcmask 244928  }
  0x7c   :  { %29 = vst.msk [vmem:[#allocation0] sm:$0x1] %vm28_vm5, %v27_v27   ;;  %v45_v31 = vpop.permute.xlu1 %44   ;;  %vm124_vm5 = vcmask 195728  }
  0x7d   :  { %35 = vst.msk [vmem:[#allocation0] sm:$0x1] %vm34_vm6, %v33_v29   ;;  %vm130_vm6 = vcmask 146528  }
  0x7e   :  { %v39_v30 = vpop.permute.xlu0 %38  }
  0x7f   :  { %41 = vst.msk [vmem:[#allocation0] sm:$0x1] %vm40_vm7, %v39_v30   ;;  %vm136_vm7 = vcmask 130128  }
  0x80   :  { %47 = vst.msk [vmem:[#allocation0] sm:$0x1] %vm46_vm8, %v45_v31   ;;  %v57_v33 = vpop.permute.xlu1 %56   ;;  %vm143_vm8 = vcmask 97328  }
  0x82   :  { %v51_v32 = vpop.permute.xlu0 %50  }
  0x83   :  { %53 = vst.msk [vmem:[#allocation0] sm:$0x1] %vm52_vm9, %v51_v32   ;;  %vm149_vm9 = vcmask 80928  }
  0x84   :  { %59 = vst.msk [vmem:[#allocation0] sm:$0x1] %vm58_vm10, %v57_v33   ;;  %v69_v35 = vpop.permute.xlu1 %68  }
  0x86   :  { %v63_v34 = vpop.permute.xlu0 %62  }
  0x87   :  { %65 = vst.msk [vmem:[#allocation0] sm:$0x1] %vm64_vm11, %v63_v34  }
  0x88   :  { %71 = vst.msk [vmem:[#allocation0] sm:$0x1] %vm70_vm12, %v69_v35   ;;  %v81_v37 = vpop.permute.xlu1 %80  }
  0x8a   :  { %v75_v36 = vpop.permute.xlu0 %74  }
  0x8b   :  { %77 = vst.msk [vmem:[#allocation0] sm:$0x1] %vm76_vm13, %v75_v36  }
  0x8c   :  { %83 = vst.msk [vmem:[#allocation0] sm:$0x1] %vm82_vm14, %v81_v37   ;;  %v93_v39 = vpop.permute.xlu1 %92  }
  0x8e   :  { %v87_v38 = vpop.permute.xlu0 %86  }
  0x8f   :  { %89 = vst.msk [vmem:[#allocation0] sm:$0x1] %vm88_vm15, %v87_v38  }
  0x90   :  { %95 = vst.msk [vmem:[#allocation0] sm:$0x1] %vm94_vm0, %v93_v39   ;;  %v105_v41 = vpop.permute.xlu1 %104  }
  0x92   :  { %v99_v40 = vpop.permute.xlu0 %98  }
  0x93   :  { %101 = vst.msk [vmem:[#allocation0] sm:$0x1] %vm100_vm1, %v99_v40  }
  0x94   :  { %107 = vst.msk [vmem:[#allocation0] sm:$0x1] %vm106_vm2, %v105_v41   ;;  %v117_v43 = vpop.permute.xlu1 %116  }
  0x96   :  { %v111_v42 = vpop.permute.xlu0 %110  }
  0x97   :  { %113 = vst.msk [vmem:[#allocation0] sm:$0x1] %vm112_vm3, %v111_v42  }
  0x98   :  { %119 = vst.msk [vmem:[#allocation0] sm:$0x1] %vm118_vm4, %v117_v43   ;;  %v129_v45 = vpop.permute.xlu1 %128  }
  0x9a   :  { %v123_v44 = vpop.permute.xlu0 %122  }
  0x9b   :  { %125 = vst.msk [vmem:[#allocation0] sm:$0x1] %vm124_vm5, %v123_v44  }
  0x9c   :  { %131 = vst.msk [vmem:[#allocation0] sm:$0x1] %vm130_vm6, %v129_v45   ;;  %v142_v47 = vpop.permute.xlu1 %141  }
  0x9d   :  { %144 = vst.msk [vmem:[#allocation0] sm:$0x1] %vm143_vm8, %v142_v47  }
  0x9e   :  { %v135_v46 = vpop.permute.xlu0 %134  }
  0x9f   :  { %138 = vst.msk [vmem:[#allocation0 + $0x8] sm:$0x1] %vm136_vm7, %v135_v46  }
  0xa2   :  { %v148_v48 = vpop.permute.xlu0 %147  }
  0xa3   :  { %151 = vst.msk [vmem:[#allocation0 + $0x8] sm:$0x1] %vm149_vm9, %v148_v48  }
  0xa4   :  { %v155_v49 = vld [vmem:[#allocation0] sm:$0x1] }
  0xa5   :  { %157 = vst [vmem:[%s326_s1] sm:$0x1] %v155_v49 }
  0xaa   :  { %v159_v50 = vld [vmem:[#allocation0 + $0x8] sm:$0x1] }
  0xab   :  { %187 = vst [vmem:[%s326_s1 + $0x1] sm:$0x1] %v159_v50 }

// kernel: tile.18
= control target key start
LH: loop header
LB: loop body
LE: loop exit
PB: predicated region body
PF: predicated region fallthrough
CT: control target
= control target key end

     0   :  { %s22_s0 = inlined_call_operand.vmem [shape: f32[16], index: 0, kind: input, shape index: {}]   ;;  %s23_s1 = inlined_call_operand.vmem [shape: f32[8,16], index: 1, kind: output, shape index: {}]  }
   0x1   :  { %v4_v0 = vld [vmem:[%s22_s0] ss:$0 sm:$0xff] }
   0x2   :  { %5 = vst [vmem:[%s23_s1] sm:$0xff] %v4_v0 }

// kernel: tile.19
= control target key start
LH: loop header
LB: loop body
LE: loop exit
PB: predicated region body
PF: predicated region fallthrough
CT: control target
= control target key end

     0   :  { %s67_s10 = smov 112   ;;  %s68_s11 = smov 80   ;;  %vm3_vm0 = vcmask 130048   ;;  %vm9_vm1 = vcmask 1048448   ;;  %vm15_vm2 = vcmask 917248   ;;  %vm21_vm3 = vcmask 786048   ;;  %s111_s0 = inlined_call_operand.vmem [shape: f32[8,16], index: 0, kind: input, shape index: {}]   ;;  %s112_s1 = inlined_call_operand.vmem [shape: f32[1,128], index: 1, kind: output, shape index: {}]  }
   0x1   :  { %v53_v0 = vld [vmem:[%s111_s0 + $0x7] sm:$0x1]   ;;  %v55_v1 = vld [vmem:[%s111_s0 + $0x5] sm:$0x1]   ;;  %v54_v2 = vld [vmem:[%s111_s0 + $0x6] sm:$0x1]  }
   0x2   :  { %7 = vrot.lane.b32.xlu0 %v53_v0, %s67_s10  ;;  %19 = vrot.lane.b32.xlu1 %v55_v1, %s68_s11  ;;  %v56_v3 = vld [vmem:[%s111_s0 + $0x4] sm:$0x1]   ;;  %v2_v4 = vld [vmem:[%s111_s0] sm:$0x1]   ;;  %s69_s18 = smov 96   ;;  %s70_s19 = smov 64  }
   0x3   :  { %4 = vst.msk [vmem:[#allocation0] sm:$0x1] %vm3_vm0, %v2_v4   ;;  %v57_v5 = vld [vmem:[%s111_s0 + $0x3] sm:$0x1]   ;;  %v58_v6 = vld [vmem:[%s111_s0 + $0x2] sm:$0x1]  }
   0x4   :  { %s71_s24 = smov 48   ;;  %s72_s25 = smov 32   ;;  %v59_v7 = vld [vmem:[%s111_s0 + $0x1] sm:$0x1]   ;;  %vm27_vm4 = vcmask 654848   ;;  %vm33_vm5 = vcmask 523648  }
   0x5   :  { %s73_s0 = smov 16   ;;  %vm39_vm6 = vcmask 392448   ;;  %vm45_vm7 = vcmask 261248  }
   0x6   :  { %13 = vrot.lane.b32.xlu0 %v54_v2, %s69_s18  ;;  %25 = vrot.lane.b32.xlu1 %v56_v3, %s70_s19 }
   0xa   :  { %31 = vrot.lane.b32.xlu0 %v57_v5, %s71_s24  ;;  %37 = vrot.lane.b32.xlu1 %v58_v6, %s72_s25 }
   0xe   :  { %43 = vrot.lane.b32.xlu0 %v59_v7, %s73_s0 }
  0x74   :  { %v8_v8 = vpop.permute.xlu0 %7   ;;  %v20_v9 = vpop.permute.xlu1 %19  }
  0x75   :  { %10 = vst.msk [vmem:[#allocation0] sm:$0x1] %vm9_vm1, %v8_v8  }
  0x78   :  { %v14_v10 = vpop.permute.xlu0 %13   ;;  %v26_v11 = vpop.permute.xlu1 %25  }
  0x79   :  { %16 = vst.msk [vmem:[#allocation0] sm:$0x1] %vm15_vm2, %v14_v10  }
  0x7a   :  { %22 = vst.msk [vmem:[#allocation0] sm:$0x1] %vm21_vm3, %v20_v9  }
  0x7b   :  { %28 = vst.msk [vmem:[#allocation0] sm:$0x1] %vm27_vm4, %v26_v11  }
  0x7c   :  { %v32_v12 = vpop.permute.xlu0 %31   ;;  %v38_v13 = vpop.permute.xlu1 %37  }
  0x7d   :  { %34 = vst.msk [vmem:[#allocation0] sm:$0x1] %vm33_vm5, %v32_v12  }
  0x7e   :  { %40 = vst.msk [vmem:[#allocation0] sm:$0x1] %vm39_vm6, %v38_v13  }
  0x80   :  { %v44_v14 = vpop.permute.xlu0 %43  }
  0x81   :  { %46 = vst.msk [vmem:[#allocation0] sm:$0x1] %vm45_vm7, %v44_v14  }
  0x88   :  { %v50_v15 = vld [vmem:[#allocation0] sm:$0x1] }
  0x89   :  { %52 = vst [vmem:[%s112_s1] sm:$0x1] %v50_v15 }

// kernel: feature_extractor_forward.1
= control target key start
LH: loop header
LB: loop body
LE: loop exit
PB: predicated region body
PF: predicated region fallthrough
CT: control target
= control target key end

     0   :  { %16 = vsyncpa [#allocation4], 0  ;;  %s3774_s0 = inlined_call_operand.vmem [shape: f32[2,28,28], index: 0, kind: input, shape index: {}]   ;;  %s3775_s1 = inlined_call_operand.vmem [shape: f32[5,28,144], index: 1, kind: input, shape index: {}]   ;;  %s3776_s2 = inlined_call_operand.vmem [shape: f32[1,144], index: 2, kind: input, shape index: {}]   ;;  %s3777_s3 = inlined_call_operand.vmem [shape: f32[12,24], index: 3, kind: input, shape index: {}]   ;;  %s3778_s4 = inlined_call_operand.vmem [shape: f32[144,72], index: 4, kind: input, shape index: {}]   ;;  %s3779_s5 = inlined_call_operand.vmem [shape: f32[5,72,128], index: 5, kind: input, shape index: {}]   ;;  %s3780_s6 = inlined_call_operand.vmem [shape: f32[1,128], index: 6, kind: input, shape index: {}]   ;;  %s3781_s7 = inlined_call_operand.vmem [shape: f32[4,8], index: 7, kind: input, shape index: {}]   ;;  %s3782_s8 = inlined_call_operand.vmem [shape: f32[128,64], index: 8, kind: input, shape index: {}]   ;;  %s3783_s9 = inlined_call_operand.vmem [shape: f32[4,64,120], index: 9, kind: input, shape index: {}]   ;;  %s3784_s10 = inlined_call_operand.vmem [shape: f32[1,120], index: 10, kind: input, shape index: {}]   ;;  %s3785_s11 = inlined_call_operand.hbm [shape: f32[2,1,120], index: 11, kind: output, shape index: {}]  }
   0x1   :  { %18 = vsyncpa [#allocation4 + $0x1], 0  ;;  %s3039_s17 = smov 0   ;;  %s3041_s18 = smov 0  }
   0x2   :  { %s3043_s19 = smov 0   ;;  %s3045_s20 = smov 0  }
   0x3 LB: > { %3787 = sst [smem:[#allocation6_spill]] %s2968_s19  ;;  %s3060_s21 = sadd.s32 4294967295, %s2972_s20   ;;  %s2972_s20 = sphi %s3045_s20, %s3797_s20   ;;  %s2968_s19 = sphi %s3043_s19, %s3794_s19   ;;  %s2964_s18 = sphi %s3041_s18, %s3796_s18   ;;  %s2960_s17 = sphi %s3039_s17, %s3795_s17  }
   0x4   : > { %s2162_s22 = sadd.s32 4294967294, %s2972_s20   ;;  %s3064_s23 = sadd.s32 1, %s2972_s20  }
   0x5   : > { %s267_s24 = sadd.s32 1, %s2968_s19  ;;  %s264_s25 = ssub.s32 %s2972_s20, %s3064_s23 }
   0x6   : > { %p277_p0 = scmp.ne.s32.totalorder %s2968_s19, %s2964_s18  ;;  %p265_p1 = scmp.eq.s32.totalorder %s264_s25, 0 }
   0x7   : > { %p278_p2 = scmp.eq.s32.totalorder %s3060_s21, 1  ;;  %p283_p3 = scmp.ne.s32.totalorder %s2964_s18, %s2960_s17 }
   0x8   : > { %p284_p4 = scmp.eq.s32.totalorder %s2162_s22, 1  ;;  %p2165_p7 = scmp.ge.s32.totalorder %s2972_s20, 1 }
   0x9   : > { %s3075_s26 = scalar_select %p265_p1, %s2968_s19, %s267_s24  }
   0xa   : > { %p3077_p5 = por %p278_p2, %p277_p0  ;;  %p3081_p6 = por %p284_p4, %p283_p3 }
   0xb   : > { %3788 = sst [smem:[#allocation7_spill]] %s3075_s26  ;;  %p340_p8 = scmp.lt.s32.totalorder %s2972_s20, 3 }
   0xd   : > { %p341_p9 = pnand %p2165_p7, %p340_p8 }
   0xe   : > { %v2169_v0 = vld [vmem:[%s3775_s1 + $0x48] sm:$0xff] (!%p341_p9)  ;;  %v2171_v1 = vld [vmem:[%s3775_s1 + $0x58] sm:$0xff] (!%p341_p9)  ;;  %v2168_v2 = vld [vmem:[%s3775_s1 + $0x40] sm:$0xff] (!%p341_p9)  ;;  %vm417_vm0 = vcmask (!%p341_p9), 1043456   ;;  %v2974_v7 = vmov (!%p341_p9), 0.0   ;;  %p379_p10 = scmp.lt.s32.totalorder (!%p341_p9), %s3060_s21, 1  ;;  %v955_v10 = vlaneseq (!%p341_p9) }
   0xf   : > { %344 = sbr.rel (%p341_p9) target bundleno = 1687 (0x697), region = 64  ;;  %v2630_v3 = vpack.c.bf16 (!%p341_p9), %v2171_v1, %v2169_v0  ;;  %v2170_v4 = vld [vmem:[%s3775_s1 + $0x50] sm:$0xff] (!%p341_p9)  ;;  %v2173_v5 = vld [vmem:[%s3775_s1 + $0x68] sm:$0xff] (!%p341_p9)  ;;  %v2175_v6 = vld [vmem:[%s3775_s1 + $0x78] sm:$0xf] (!%p341_p9)  ;;  %488 = vmatprep.mubr.f32.mxu0 (!%p341_p9), %v2974_v7  ;;  %1050 = vmatprep.mubr.f32.mxu1 (!%p341_p9), %v2974_v7  ;;  %vm2975_vm1 = vmmov (!%p341_p9), 1  }
  0x10   : > { %v2632_v8 = vpack.c.bf16 (!%p341_p9), %v2170_v4, %v2168_v2  ;;  %v2634_v9 = vpack.c.bf16 (!%p341_p9), %v2175_v6, %v2173_v5  ;;  %vm3108_vm2 = vmpackc.low (!%p341_p9), %vm417_vm0, %vm2975_vm1  ;;  %v2172_v11 = vld [vmem:[%s3775_s1 + $0x60] sm:$0xff] (!%p341_p9)  ;;  %v2174_v12 = vld [vmem:[%s3775_s1 + $0x70] sm:$0xf] (!%p341_p9)  ;;  %vm407_vm3 = vcmask (!%p341_p9), 228352   ;;  %vm979_vm4 = vcmask (!%p341_p9), 195584   ;;  %s2300_s13 = sshll.u32 (!%p341_p9), %s3060_s21, 4 }
  0x11   : > { %2631 = vmatprep.subr.bf16.mxu0 (!%p341_p9), %v2630_v3  ;;  %v388_v13 = vld [vmem:[%s3775_s1 + $0x8] sm:$0xff] (!%p341_p9)  ;;  %v390_v14 = vld [vmem:[%s3775_s1 + $0x18] sm:$0xff] (!%p341_p9)  ;;  %v2637_v15 = vpack.c.bf16 (!%p341_p9), %v2174_v12, %v2172_v11  ;;  %v387_v17 = vld [vmem:[%s3775_s1] sm:$0xff] (!%p341_p9)  ;;  %vm1081_vm5 = vcmask (!%p341_p9), 130048   ;;  %vm2977_vm6 = vmmov (!%p341_p9), 0   ;;  %vm1163_vm7 = vcmask (!%p341_p9), 588800   ;;  %s3732_s24 = scalar_lea.hbm (!%p341_p9), %s3785_s11, %s2300_s13 }
  0x12   : > { %2633 = vmatpush1.bf16.msra.mxu0 (!%p341_p9), %v2632_v8  ;;  %v2640_v16 = vpack.c.bf16 (!%p341_p9), %v390_v14, %v388_v13  ;;  %v389_v18 = vld [vmem:[%s3775_s1 + $0x10] sm:$0xff] (!%p341_p9)  ;;  %v392_v19 = vld [vmem:[%s3775_s1 + $0x28] sm:$0xff] (!%p341_p9)  ;;  %v394_v20 = vld [vmem:[%s3775_s1 + $0x38] sm:$0xf] (!%p341_p9)  ;;  %vm1165_vm8 = vcmask (!%p341_p9), 584704   ;;  %vm1599_vm9 = vcmask (!%p341_p9), 64512  }
  0x13   : > { %2636 = vmatprep.subr.msk.bf16.mxu0 (!%p341_p9), %vm3108_vm2, %v2634_v9  ;;  %v2642_v22 = vpack.c.bf16 (!%p341_p9), %v389_v18, %v387_v17  ;;  %v2644_v23 = vpack.c.bf16 (!%p341_p9), %v394_v20, %v392_v19  ;;  %v391_v24 = vld [vmem:[%s3775_s1 + $0x20] sm:$0xff] (!%p341_p9)  ;;  %v393_v25 = vld [vmem:[%s3775_s1 + $0x30] sm:$0xf] (!%p341_p9)  ;;  %v2187_v26 = vld [vmem:[%s3775_s1 + $0x88] sm:$0xff] (!%p341_p9)  ;;  %vm1778_vm10 = vcmask (!%p341_p9), 523264   ;;  %vm2092_vm11 = vcmask (!%p341_p9), 974848  }
  0x14   : > { %v2189_v27 = vld [vmem:[%s3775_s1 + $0x98] sm:$0xff] (!%p341_p9)  ;;  %v2647_v29 = vpack.c.bf16 (!%p341_p9), %v393_v25, %v391_v24  ;;  %v2186_v32 = vld [vmem:[%s3775_s1 + $0x80] sm:$0xff] (!%p341_p9)  ;;  %v2188_v33 = vld [vmem:[%s3775_s1 + $0x90] sm:$0xff] (!%p341_p9) }
  0x15   : > { %v2650_v30 = vpack.c.bf16 (!%p341_p9), %v2189_v27, %v2187_v26  ;;  %v2191_v34 = vld [vmem:[%s3775_s1 + $0xa8] sm:$0xff] (!%p341_p9)  ;;  %v2193_v35 = vld [vmem:[%s3775_s1 + $0xb8] sm:$0xf] (!%p341_p9)  ;;  %v2652_v37 = vpack.c.bf16 (!%p341_p9), %v2188_v33, %v2186_v32  ;;  %v2190_v39 = vld [vmem:[%s3775_s1 + $0xa0] sm:$0xff] (!%p341_p9) }
  0x16   : > { %s380_s16 = scalar_select %p379_p10, %s3060_s21, 1  ;;  %2639 = vmatpush1.bf16.msk.msra.mxu0 %vm3108_vm2, %v2637_v15  ;;  %v2654_v38 = vpack.c.bf16 %v2193_v35, %v2191_v34  ;;  %v2192_v40 = vld [vmem:[%s3775_s1 + $0xb0] sm:$0xf]  ;;  %v2200_v41 = vld [vmem:[%s3775_s1 + $0xc8] sm:$0xff]  ;;  %v2202_v42 = vld [vmem:[%s3775_s1 + $0xd8] sm:$0xff]  ;;  %v2976_v15 = vmov 0.0|0.0  }
  0x17   : > { %2641 = vmatprep.subr.bf16.mxu0 %v2640_v16  ;;  %v2657_v44 = vpack.c.bf16 %v2192_v40, %v2190_v39  ;;  %v2660_v45 = vpack.c.bf16 %v2202_v42, %v2200_v41  ;;  %v2199_v47 = vld [vmem:[%s3775_s1 + $0xc0] sm:$0xff]  ;;  %v2201_v48 = vld [vmem:[%s3775_s1 + $0xd0] sm:$0xff]  ;;  %v2204_v49 = vld [vmem:[%s3775_s1 + $0xe8] sm:$0xff]  ;;  %v956_v16 = vshrl.u32 %v955_v10, 7  ;;  %s2978_s21 = smov [#allocation3]  }
  0x18   : > { %s2303_s30 = sshll.u32 %s380_s16, 5  ;;  %v2206_v50 = vld [vmem:[%s3775_s1 + $0xf8] sm:$0xf]  ;;  %v2662_v52 = vpack.c.bf16 %v2201_v48, %v2199_v47  ;;  %v2203_v54 = vld [vmem:[%s3775_s1 + $0xe0] sm:$0xff]  ;;  %v2205_v55 = vld [vmem:[%s3775_s1 + $0xf0] sm:$0xf] }
  0x19   : > { %s3136_s25 = scalar_lea.vmem %s3774_s0, %s2303_s30  ;;  %v2664_v53 = vpack.c.bf16 %v2206_v50, %v2204_v49  ;;  %v2213_v56 = vld [vmem:[%s3775_s1 + $0x108] sm:$0xff]  ;;  %v2215_v57 = vld [vmem:[%s3775_s1 + $0x118] sm:$0xff]  ;;  %v2667_v59 = vpack.c.bf16 %v2205_v55, %v2203_v54  ;;  %v2212_v62 = vld [vmem:[%s3775_s1 + $0x100] sm:$0xff]  ;;  %v957_v17 = vsub.s32 0, %v956_v16  ;;  %v961_v19 = vsub.s32 1, %v956_v16  ;;  %s377_s30 = sand.u32 1, %s2964_s18  }
  0x1a   : > { %v395_v21 = vld [vmem:[%s3136_s25 + $0x1] sm:$0xff]  ;;  %v396_v28 = vld [vmem:[%s3136_s25 + $0x9] sm:$0xff]  ;;  %v397_v31 = vld [vmem:[%s3136_s25 + $0x11] sm:$0xff]  ;;  %v2670_v60 = vpack.c.bf16 %v2215_v57, %v2213_v56  ;;  %s378_s14 = scalar_lea.vmem [#allocation3], %s377_s30  ;;  %s2095_s29 = scalar_lea.sflag [#allocation4], %s377_s30 }
  0x1b   : > { %2178 = vmatmul.mubr.msk.f32.vlgmr.msra.gmra.mrb[0].mxu0 %vm407_vm3, %v395_v21  ;;  %v384_v36 = vld [vmem:[%s3136_s25] sm:$0xff]  ;;  %v385_v43 = vld [vmem:[%s3136_s25 + $0x8] sm:$0xff]  ;;  %v386_v46 = vld [vmem:[%s3136_s25 + $0x10] sm:$0xff]  ;;  %s2107_s19 = sshll.u32 %s378_s14, 4  ;;  %s2914_s16 = sshll.u32 %s2978_s21, 4  ;;  %s3734_s19 = int_to_ptr.vmem [resolvable:$true] %s2107_s19  ;;  %s2915_s16 = int_to_ptr.vmem [resolvable:$false] %s2914_s16 }
  0x1c   : > { %494 = vmatprep.mubr.f32.mxu0 %v2974_v7  ;;  %2643 = vmatpush1.bf16.msra.mxu0 %v2642_v22  ;;  %v605_v51 = vld [vmem:[%s3136_s25 + $0x2] sm:$0xff]  ;;  %v606_v58 = vld [vmem:[%s3136_s25 + $0xa] sm:$0xff]  ;;  %v607_v61 = vld [vmem:[%s3136_s25 + $0x12] sm:$0xff]  ;;  %s2916_s12 = scalar_lea.vmem %s2915_s16, 32  ;;  %p2917_p0 = scmp.lt.s32.totalorder %s3734_s19, %s2915_s16 }
  0x1d   : > { %2646 = vmatprep.subr.msk.bf16.mxu0 %vm3108_vm2, %v2644_v23  ;;  %v2214_v63 = vld [vmem:[%s3775_s1 + $0x110] sm:$0xff]  ;;  %v2217_v0 = vld [vmem:[%s3775_s1 + $0x128] sm:$0xff]  ;;  %v2219_v1 = vld [vmem:[%s3775_s1 + $0x138] sm:$0xf] }
  0x1e   : > { %v721_v2 = vld [vmem:[%s3136_s25 + $0x3] sm:$0xff]  ;;  %v2672_v3 = vpack.c.bf16 %v2214_v63, %v2212_v62  ;;  %v2674_v4 = vpack.c.bf16 %v2219_v1, %v2217_v0  ;;  %v2218_v6 = vld [vmem:[%s3775_s1 + $0x130] sm:$0xf]  ;;  %v839_v14 = vld [vmem:[%s3136_s25 + $0x14] sm:$0xff] }
  0x1f   : > { %2179 = vmatmul.mubr.msk.f32.gmra.mrb[2].mxu0 %vm407_vm3, %v396_v28  ;;  %v2216_v5 = vld [vmem:[%s3775_s1 + $0x120] sm:$0xff]  ;;  %v722_v8 = vld [vmem:[%s3136_s25 + $0xb] sm:$0xff]  ;;  %v723_v11 = vld [vmem:[%s3136_s25 + $0x13] sm:$0xff] }
  0x20   : > { %500 = vmatprep.mubr.f32.mxu0 %v2974_v7  ;;  %2649 = vmatpush1.bf16.msk.msra.mxu0 %vm3108_vm2, %v2647_v29  ;;  %v2677_v9 = vpack.c.bf16 %v2218_v6, %v2216_v5  ;;  %v837_v12 = vld [vmem:[%s3136_s25 + $0x4] sm:$0xff]  ;;  %v838_v13 = vld [vmem:[%s3136_s25 + $0xc] sm:$0xff]  ;;  %v953_v18 = vld [vmem:[%s3776_s2] sm:$0x3]  ;;  %s2910_s25 = scalar_lea.vmem %s3734_s19, 16 }
  0x21   : > { %2651 = vmatprep.subr.bf16.mxu0 %v2650_v30  ;;  %v958_v20 = vrot.slane %v953_v18, %v957_v17  ;;  %v962_v22 = vrot.slane %v953_v18, %v961_v19  ;;  %v1063_v41 = vld [vmem:[%s3778_s4] sm:$0xff]  ;;  %v1064_v42 = vld [vmem:[%s3778_s4 + $0x8] sm:$0xff]  ;;  %v1066_v47 = vld [vmem:[%s3778_s4 + $0x18] sm:$0xff]  ;;  %p2911_p11 = scmp.ne.s32.totalorder %s3734_s19, %s2910_s25  ;;  %p2918_p1 = scmp.lt.s32.totalorder %s2916_s12, %s2910_s25 }
  0x22   : > { %v978_v48 = vld [vmem:[%s3777_s3 + $0x8] sm:$0xf]  ;;  %v1067_v50 = vld [vmem:[%s3778_s4 + $0x20] sm:$0xff]  ;;  %v1070_v54 = vld [vmem:[%s3778_s4 + $0x38] sm:$0xff] }
  0x23   : > { %2180 = vmatmul.mubr.msk.f32.gmra.mrb[4].mxu0 %vm407_vm3, %v397_v31  ;;  %v1071_v56 = vld [vmem:[%s3778_s4 + $0x40] sm:$0xff]  ;;  %v1072_v57 = vld [vmem:[%s3778_s4 + $0x48] sm:$0xff]  ;;  %v1077_v1 = vld [vmem:[%s3778_s4 + $0x70] sm:$0xff]  ;;  %p2912_p12 = pnand %p2911_p11, %p3077_p5  ;;  %p2919_p2 = por %p2918_p1, %p2917_p0 }
  0x24   : > { %586 = vmatprep.mubr.f32.mxu0 %v2974_v7  ;;  %v1075_v62 = vld [vmem:[%s3778_s4 + $0x60] sm:$0xff]  ;;  %v1076_v63 = vld [vmem:[%s3778_s4 + $0x68] sm:$0xff]  ;;  %v2230_v19 = vld [vmem:[%s3779_s5 + $0x50] sm:$0xff] }
  0x25   : > { %v2703_v0 = vpack.c.bf16 %v1076_v63, %v1075_v62  ;;  %v1080_v5 = vld [vmem:[%s3778_s4 + $0x88] sm:$0xff]  ;;  %v1172_v10 = vld [vmem:[%s3779_s5 + $0x20] sm:$0xff]  ;;  %v2257_v63 = vld [vmem:[%s3779_s5 + $0x110] sm:$0xff]  ;;  %p2913_p13 = pneg %p2912_p12 }
  0x26   : > { %v1173_v16 = vld [vmem:[%s3779_s5 + $0x28] sm:$0xff] }
  0x27   : > { %2183 = vmatmul.mubr.msk.f32.vlgmr.msra.gmra.mrb[0].mxu0 %vm407_vm3, %v384_v36  ;;  %v2730_v17 = vpack.c.bf16 %v1173_v16, %v1172_v10  ;;  %v2229_v18 = vld [vmem:[%s3779_s5 + $0x48] sm:$0xff]  ;;  %p2920_p3 = pnand %p2919_p2, %p2913_p13 }
  0x28   : > { %592 = vmatprep.mubr.f32.mxu0 %v2974_v7  ;;  %2653 = vmatpush1.bf16.msra.mxu0 %v2652_v37  ;;  %v2256_v62 = vld [vmem:[%s3779_s5 + $0x108] sm:$0xff] }
  0x29   : > { %2656 = vmatprep.subr.msk.bf16.mxu0 %vm3108_vm2, %v2654_v38 }
  0x2b   : > { %2184 = vmatmul.mubr.msk.f32.gmra.mrb[2].mxu0 %vm407_vm3, %v385_v43 }
  0x2c   : > { %598 = vmatprep.mubr.f32.mxu0 %v2974_v7  ;;  %2659 = vmatpush1.bf16.msk.msra.mxu0 %vm3108_vm2, %v2657_v44  ;;  %v977_v44 = vld [vmem:[%s3777_s3] sm:$0xff] }
  0x2d   : > { %2661 = vmatprep.subr.bf16.mxu0 %v2660_v45  ;;  %v2685_v45 = vpack.c.bf16 %v1064_v42, %v1063_v41  ;;  %v2250_v41 = vld [vmem:[%s3779_s5 + $0xd8] sm:$0xff]  ;;  %v2251_v42 = vld [vmem:[%s3779_s5 + $0xe0] sm:$0xff] }
  0x2f   : > { %2185 = vmatmul.mubr.msk.f32.gmra.mrb[4].mxu0 %vm407_vm3, %v386_v46  ;;  %v1065_v46 = vld [vmem:[%s3778_s4 + $0x10] sm:$0xff] }
  0x30   : > { %696 = vmatprep.mubr.f32.mxu0 %v2974_v7  ;;  %v2688_v49 = vpack.c.bf16 %v1066_v47, %v1065_v46  ;;  %v2240_v46 = vld [vmem:[%s3779_s5 + $0x90] sm:$0xff]  ;;  %v2241_v47 = vld [vmem:[%s3779_s5 + $0x98] sm:$0xff] }
  0x33   : > { %2196 = vmatmul.mubr.msk.f32.vlgmr.msra.gmra.mrb[0].mxu0 %vm407_vm3, %v605_v51  ;;  %v1068_v51 = vld [vmem:[%s3778_s4 + $0x28] sm:$0xff] }
  0x34   : > { %702 = vmatprep.mubr.f32.mxu0 %v2974_v7  ;;  %2663 = vmatpush1.bf16.msra.mxu0 %v2662_v52  ;;  %v2691_v52 = vpack.c.bf16 %v1068_v51, %v1067_v50  ;;  %v2736_v51 = vpack.c.bf16 %v2241_v47, %v2240_v46  ;;  %v1675_v46 = vld [vmem:[%s3782_s8 + $0x10] sm:$0xff]  ;;  %v1676_v47 = vld [vmem:[%s3782_s8 + $0x18] sm:$0xff] }
  0x35   : > { %2666 = vmatprep.subr.msk.bf16.mxu0 %vm3108_vm2, %v2664_v53  ;;  %v1069_v53 = vld [vmem:[%s3778_s4 + $0x30] sm:$0xff] }
  0x36   : > { %v2694_v55 = vpack.c.bf16 %v1070_v54, %v1069_v53  ;;  %v2242_v53 = vld [vmem:[%s3779_s5 + $0xa0] sm:$0xff]  ;;  %v2243_v54 = vld [vmem:[%s3779_s5 + $0xa8] sm:$0xff] }
  0x37   : > { %2197 = vmatmul.mubr.msk.f32.gmra.mrb[2].mxu0 %vm407_vm3, %v606_v58  ;;  %v2697_v58 = vpack.c.bf16 %v1072_v57, %v1071_v56  ;;  %v2255_v56 = vld [vmem:[%s3779_s5 + $0x100] sm:$0xff] }
  0x38   : > { %708 = vmatprep.mubr.f32.mxu0 %v2974_v7  ;;  %2669 = vmatpush1.bf16.msk.msra.mxu0 %vm3108_vm2, %v2667_v59  ;;  %v1073_v59 = vld [vmem:[%s3778_s4 + $0x50] sm:$0xff] }
  0x39   : > { %2671 = vmatprep.subr.bf16.mxu0 %v2670_v60  ;;  %v1074_v60 = vld [vmem:[%s3778_s4 + $0x58] sm:$0xff] }
  0x3b   : > { %2198 = vmatmul.mubr.msk.f32.gmra.mrb[4].mxu0 %vm407_vm3, %v607_v61  ;;  %v2700_v61 = vpack.c.bf16 %v1074_v60, %v1073_v59  ;;  %v2244_v60 = vld [vmem:[%s3779_s5 + $0xb0] sm:$0xff] }
  0x3c   : > { %812 = vmatprep.mubr.f32.mxu0 %v2974_v7 }
  0x3f   : > { %2209 = vmatmul.mubr.msk.f32.vlgmr.msra.gmra.mrb[0].mxu0 %vm407_vm3, %v721_v2  ;;  %v1078_v2 = vld [vmem:[%s3778_s4 + $0x78] sm:$0xff] }
  0x40   : > { %818 = vmatprep.mubr.f32.mxu0 %v2974_v7  ;;  %2673 = vmatpush1.bf16.msra.mxu0 %v2672_v3  ;;  %v2706_v3 = vpack.c.bf16 %v1078_v2, %v1077_v1  ;;  %v2757_v1 = vpack.c.bf16 %v2257_v63, %v2256_v62  ;;  %v2246_v2 = vld [vmem:[%s3779_s5 + $0xc0] sm:$0xff]  ;;  %v1686_v62 = vld [vmem:[%s3782_s8 + $0x68] sm:$0xff] }
  0x41   : > { %2676 = vmatprep.subr.msk.bf16.mxu0 %vm3108_vm2, %v2674_v4  ;;  %v1079_v4 = vld [vmem:[%s3778_s4 + $0x80] sm:$0xff] }
  0x42   : > { %v2709_v6 = vpack.c.bf16 %v1080_v5, %v1079_v4  ;;  %v2258_v5 = vld [vmem:[%s3779_s5 + $0x118] sm:$0xff] }
  0x43   : > { %2210 = vmatmul.mubr.msk.f32.gmra.mrb[2].mxu0 %vm407_vm3, %v722_v8  ;;  %v1168_v8 = vld [vmem:[%s3779_s5] sm:$0xff] }
  0x44   : > { %824 = vmatprep.mubr.f32.mxu0 %v2974_v7  ;;  %2679 = vmatpush1.bf16.msk.msra.mxu0 %vm3108_vm2, %v2677_v9  ;;  %v1169_v9 = vld [vmem:[%s3779_s5 + $0x8] sm:$0xff] }
  0x45   : > { %2723 = vmatprep.subr.bf16.mxu0 %v2976_v15 }
  0x47   : > { %2211 = vmatmul.mubr.msk.f32.gmra.mrb[4].mxu0 %vm407_vm3, %v723_v11  ;;  %v2724_v11 = vpack.c.bf16 %v1169_v9, %v1168_v8  ;;  %v2261_v8 = vld [vmem:[%s3779_s5 + $0x128] sm:$0xff] }
  0x48   : > { %928 = vmatprep.mubr.f32.mxu0 %v2974_v7 }
  0x4b   : > { %2222 = vmatmul.mubr.msk.f32.vlgmr.msra.gmra.mrb[0].mxu0 %vm407_vm3, %v837_v12  ;;  %v1170_v12 = vld [vmem:[%s3779_s5 + $0x10] sm:$0xff] }
  0x4c   : > { %934 = vmatprep.mubr.f32.mxu0 %v2974_v7  ;;  %2725 = vmatpush3.bf16.msra.mxu0 %v2724_v11  ;;  %v2248_v11 = vld [vmem:[%s3779_s5 + $0xd0] sm:$0xff] }
  0x4d   : > { %2726 = vmatprep.subr.bf16.mxu0 %v2976_v15 }
  0x4f   : > { %2223 = vmatmul.mubr.msk.f32.gmra.mrb[2].mxu0 %vm407_vm3, %v838_v13  ;;  %v1171_v13 = vld [vmem:[%s3779_s5 + $0x18] sm:$0xff] }
  0x50   : > { %940 = vmatprep.mubr.f32.mxu0 %v2974_v7 }
  0x53   : > { %2224 = vmatmul.mubr.msk.f32.gmra.mrb[4].mxu0 %vm407_vm3, %v839_v14  ;;  %v2727_v14 = vpack.c.bf16 %v1171_v13, %v1170_v12  ;;  %v2262_v13 = vld [vmem:[%s3779_s5 + $0x130] sm:$0xff] }
  0x54   : > { %2448 = vmatprep.mubr.msk.f32.mxu0 %vm2977_vm6, %v2974_v7 }
  0x55   : > { %2728 = vmatpush3.bf16.msra.mxu0 %v2727_v14  ;;  %v2263_v14 = vld [vmem:[%s3779_s5 + $0x138] sm:$0xff] }
  0x56   : > { %2729 = vmatprep.subr.bf16.mxu0 %v2976_v15  ;;  %v2763_v16 = vpack.c.bf16 %v2263_v14, %v2262_v13  ;;  %v2278_v14 = vld [vmem:[%s3783_s9 + $0x70] sm:$0xff] }
  0x59   : > { %2731 = vmatpush3.bf16.msra.mxu0 %v2730_v17  ;;  %v2264_v17 = vld [vmem:[%s3779_s5 + $0x140] sm:$0xff] }
  0x5a   : > { %2732 = vmatprep.subr.bf16.mxu0 %v2976_v15 }
 0x11e   : > { %v930_v21 = vpop.f32.mrb[0].mxu0 }
 0x11f   : > { %v932_v23 = vpop.f32.mrb[1].mxu0  ;;  %v965_v24 = vadd.f32 %v958_v20, %v930_v21  ;;  %v2712_v21 = vpack.c.bf16 %v2230_v19, %v2229_v18  ;;  %v2265_v18 = vld [vmem:[%s3779_s5 + $0x148] sm:$0xff] }
 0x120   : > { %v966_v25 = vadd.f32 %v962_v22, %v932_v23  ;;  %v2231_v23 = vld [vmem:[%s3779_s5 + $0x58] sm:$0xff]  ;;  %v2766_v19 = vpack.c.bf16 %v2265_v18, %v2264_v17  ;;  %v2282_v17 = vld [vmem:[%s3783_s9 + $0x80] sm:$0xff]  ;;  %v2283_v18 = vld [vmem:[%s3783_s9 + $0x88] sm:$0xff] }
 0x121   : > { %v971_v30 = vmax.f32 %v965_v24, 0.0  ;;  %v2232_v24 = vld [vmem:[%s3779_s5 + $0x60] sm:$0xff] }
 0x122   : > { %v936_v26 = vpop.f32.mrb[2].mxu0  ;;  %v972_v32 = vmax.f32 %v966_v25, 0.0 }
 0x123   : > { %v967_v27 = vadd.f32 %v958_v20, %v936_v26  ;;  %v938_v28 = vpop.f32.mrb[3].mxu0  ;;  %v2715_v26 = vpack.c.bf16 %v2232_v24, %v2231_v23  ;;  %v2268_v23 = vld [vmem:[%s3779_s5 + $0x160] sm:$0xff] }
 0x124   : > { %v968_v29 = vadd.f32 %v962_v22, %v938_v28  ;;  %v2233_v28 = vld [vmem:[%s3779_s5 + $0x68] sm:$0xff] }
 0x125   : > { %v973_v31 = vmax.f32 %v967_v27, 0.0 }
 0x126   : > { %v974_v33 = vmax.f32 %v968_v29, 0.0  ;;  %v942_v34 = vpop.f32.mrb[4].mxu0  ;;  %v2234_v29 = vld [vmem:[%s3779_s5 + $0x70] sm:$0xff] }
 0x127   : > { %v944_v35 = vpop.f32.mrb[5].mxu0  ;;  %v2682_v36 = vpack.c.bf16 %v973_v31, %v971_v30  ;;  %v969_v39 = vadd.f32 %v958_v20, %v942_v34  ;;  %v1174_v30 = vld [vmem:[%s3779_s5 + $0x30] sm:$0xff]  ;;  %v2718_v31 = vpack.c.bf16 %v2234_v29, %v2233_v28  ;;  %v2235_v34 = vld [vmem:[%s3779_s5 + $0x78] sm:$0xff] }
 0x128   : > { %v970_v37 = vadd.f32 %v962_v22, %v944_v35  ;;  %v2680_v38 = vpack.c.bf16 %v974_v33, %v972_v32  ;;  %v1175_v32 = vld [vmem:[%s3779_s5 + $0x38] sm:$0xff]  ;;  %v2236_v35 = vld [vmem:[%s3779_s5 + $0x80] sm:$0xff] }
 0x129   : > { %v975_v43 = vmax.f32 %v969_v39, 0.0  ;;  %v2733_v33 = vpack.c.bf16 %v1175_v32, %v1174_v30 }
 0x12a   : > { %v976_v40 = vmax.f32 %v970_v37, 0.0  ;;  %2681 = vmatprep.subr.bf16.mxu1 %v2680_v38  ;;  %v1176_v37 = vld [vmem:[%s3779_s5 + $0x40] sm:$0xff]  ;;  %v2237_v38 = vld [vmem:[%s3779_s5 + $0x88] sm:$0xff] }
 0x12b   : > { %2683 = vmatpush1.bf16.msra.mxu1 %v2682_v36  ;;  %2734 = vmatpush3.bf16.msra.mxu0 %v2733_v33  ;;  %v2721_v36 = vpack.c.bf16 %v2236_v35, %v2235_v34 }
 0x12c   : > { %990 = vmatprep.subr.mxu1 %v976_v40  ;;  %2446 = vmatprep.subr.mxu0 %v2974_v7 }
 0x12f   : > { %991 = vmatpush1.msra.mxu1 %v975_v43  ;;  %2447 = vmatpush3.msra.mxu0 %v1176_v37  ;;  %v2270_v37 = vld [vmem:[%s3780_s6] ss:$0 sm:$0xff] }
 0x130   : > { %2225 = vmatmul.mubr.msk.f32.vlgmr.msra.gmra.mrb[0].mxu1 %vm979_vm4, %v977_v44  ;;  %2684 = vmatprep.subr.bf16.mxu1 %v2976_v15 }
 0x131   : > { %1056 = vmatprep.mubr.f32.mxu1 %v2974_v7  ;;  %2686 = vmatpush1.bf16.msra.mxu1 %v2685_v45  ;;  %v2748_v45 = vpack.c.bf16 %v2251_v42, %v2250_v41  ;;  %v1674_v41 = vld [vmem:[%s3782_s8 + $0x8] sm:$0xff] }
 0x132   : > { %2687 = vmatprep.subr.bf16.mxu1 %v2976_v15  ;;  %2747 = vmatprep.subr.bf16.mxu0 %v2976_v15 }
 0x134   : > { %2226 = vmatmul.mubr.msk.f32.gmra.mrb[2].mxu1 %vm979_vm4, %v978_v48  ;;  %v2252_v48 = vld [vmem:[%s3779_s5 + $0xe8] sm:$0xff] }
 0x135   : > { %2689 = vmatpush1.bf16.msra.mxu1 %v2688_v49  ;;  %v2253_v49 = vld [vmem:[%s3779_s5 + $0xf0] sm:$0xff] }
 0x136   : > { %2690 = vmatprep.subr.bf16.mxu1 %v2976_v15 }
 0x139   : > { %2692 = vmatpush1.bf16.msra.mxu1 %v2691_v52  ;;  %v2751_v52 = vpack.c.bf16 %v2253_v49, %v2252_v48  ;;  %v2775_v48 = vpack.c.bf16 %v1676_v47, %v1675_v46  ;;  %v1677_v49 = vld [vmem:[%s3782_s8 + $0x20] sm:$0xff] }
 0x13a   : > { %2693 = vmatprep.subr.bf16.mxu1 %v2976_v15  ;;  %v2291_v47 = vld [vmem:[%s3783_s9 + $0xc0] sm:$0xff] }
 0x13d   : > { %2695 = vmatpush1.bf16.msra.mxu1 %v2694_v55  ;;  %v2254_v55 = vld [vmem:[%s3779_s5 + $0xf8] sm:$0xff] }
 0x13e   : > { %2696 = vmatprep.subr.bf16.mxu1 %v2976_v15  ;;  %v2754_v59 = vpack.c.bf16 %v2255_v56, %v2254_v55  ;;  %v1681_v55 = vld [vmem:[%s3782_s8 + $0x40] sm:$0xff]  ;;  %v1682_v56 = vld [vmem:[%s3782_s8 + $0x48] sm:$0xff] }
 0x141   : > { %2698 = vmatpush1.bf16.msra.mxu1 %v2697_v58  ;;  %v2739_v58 = vpack.c.bf16 %v2243_v54, %v2242_v53  ;;  %v1680_v53 = vld [vmem:[%s3782_s8 + $0x38] sm:$0xff] }
 0x142   : > { %2699 = vmatprep.subr.bf16.mxu1 %v2976_v15 }
 0x145   : > { %2701 = vmatpush1.bf16.msra.mxu1 %v2700_v61  ;;  %v2245_v61 = vld [vmem:[%s3779_s5 + $0xb8] sm:$0xff] }
 0x146   : > { %2702 = vmatprep.subr.bf16.mxu1 %v2976_v15 }
 0x149   : > { %2704 = vmatpush1.bf16.msra.mxu1 %v2703_v0  ;;  %v2742_v0 = vpack.c.bf16 %v2245_v61, %v2244_v60  ;;  %v1685_v61 = vld [vmem:[%s3782_s8 + $0x60] sm:$0xff] }
 0x14a   : > { %2705 = vmatprep.subr.bf16.mxu1 %v2976_v15  ;;  %v2790_v63 = vpack.c.bf16 %v1686_v62, %v1685_v61 }
 0x14d   : > { %2707 = vmatpush1.bf16.msra.mxu1 %v2706_v3  ;;  %v2247_v3 = vld [vmem:[%s3779_s5 + $0xc8] sm:$0xff] }
 0x14e   : > { %2708 = vmatprep.subr.bf16.mxu1 %v2976_v15  ;;  %v2745_v4 = vpack.c.bf16 %v2247_v3, %v2246_v2  ;;  %v2272_v3 = vld [vmem:[%s3783_s9 + $0x40] sm:$0xff] }
 0x151   : > { %2710 = vmatpush1.bf16.msra.mxu1 %v2709_v6  ;;  %v2260_v6 = vld [vmem:[%s3779_s5 + $0x120] sm:$0xff] }
 0x152   : > { %2711 = vmatprep.subr.bf16.mxu1 %v2976_v15  ;;  %v2760_v12 = vpack.c.bf16 %v2261_v8, %v2260_v6  ;;  %v2274_v6 = vld [vmem:[%s3783_s9 + $0x50] sm:$0xff]  ;;  %v2275_v8 = vld [vmem:[%s3783_s9 + $0x58] sm:$0xff] }
 0x203   : > { %v1052_v20 = vpop.f32.mrb[0].mxu1 }
 0x204   : > { %v1054_v22 = vpop.f32.mrb[1].mxu1 }
 0x205   : > { %2227 = vmatprep.mubr.msk.f32.mxu1 %vm1081_vm5, %v1054_v22 }
 0x206   : > { %1153 = vmatmul.mubr.f32.vlgmr.msra.gmra.mrb[4].mxu1 %v1052_v20  ;;  %v2266_v20 = vld [vmem:[%s3779_s5 + $0x150] sm:$0xff] }
 0x207   : > { %v1058_v25 = vpop.f32.mrb[2].mxu1  ;;  %2713 = vmatpush3.bf16.msra.mxu1 %v2712_v21  ;;  %v2267_v21 = vld [vmem:[%s3779_s5 + $0x158] sm:$0xff] }
 0x208   : > { %v1060_v27 = vpop.f32.mrb[3].mxu1  ;;  %2714 = vmatprep.subr.bf16.mxu1 %v2976_v15  ;;  %v2769_v22 = vpack.c.bf16 %v2267_v21, %v2266_v20  ;;  %v2284_v20 = vld [vmem:[%s3783_s9 + $0x90] sm:$0xff]  ;;  %v2285_v21 = vld [vmem:[%s3783_s9 + $0x98] sm:$0xff] }
 0x209   : > { %2228 = vmatprep.mubr.msk.f32.mxu1 %vm1081_vm5, %v1060_v27 }
 0x20a   : > { %1158 = vmatmul.mubr.f32.gmra.mrb[6].mxu1 %v1058_v25 }
 0x20b   : > { %2716 = vmatpush3.bf16.msra.mxu1 %v2715_v26  ;;  %2427 = vmatprep.mubr.msk.f32.mxu1 %vm2977_vm6, %v2974_v7 }
 0x20c   : > { %2717 = vmatprep.subr.bf16.mxu1 %v2976_v15 }
 0x20f   : > { %2719 = vmatpush3.bf16.msra.mxu1 %v2718_v31 }
 0x210   : > { %2720 = vmatprep.subr.bf16.mxu1 %v2976_v15 }
 0x213   : > { %2722 = vmatpush3.bf16.msra.mxu1 %v2721_v36 }
 0x214   : > { %2425 = vmatprep.subr.mxu1 %v2974_v7 }
 0x217   : > { %2426 = vmatpush3.msra.mxu1 %v2237_v38 }
 0x218   : > { %2735 = vmatprep.subr.bf16.mxu1 %v2976_v15 }
 0x2d9   : > { %v1154_v39 = vpop.f32.mrb[4].mxu1 }
 0x2da   : > { %1164 = vst.msk [vmem:[#allocation2] sm:$0xff] %vm1163_vm7, %v1154_v39  ;;  %v1156_v40 = vpop.f32.mrb[5].mxu1 }
 0x2db   : > { %v1673_v40 = vld [vmem:[%s3782_s8] sm:$0xff] }
 0x2dd   : > { %v1159_v43 = vpop.f32.mrb[6].mxu1 }
 0x2de   : > { %1166 = vst.msk [vmem:[#allocation2 + $0x8] sm:$0xf] %vm1165_vm8, %v1159_v43  ;;  %v1161_v44 = vpop.f32.mrb[7].mxu1 }
 0x2df   : > { %v1598_v44 = vld [vmem:[%s3781_s7] sm:$0xf] }
 0x2e1   : > { %v1167_v50 = vld [vmem:[#allocation2] sm:$0xff] }
 0x2e2   : > { %2449 = vmatmul.mubr.msk.f32.vlgmr.msra.gmra.mrb[6].mxu0 %vm1163_vm7, %v1167_v50  ;;  %v1678_v50 = vld [vmem:[%s3782_s8 + $0x28] sm:$0xff] }
 0x2e3   : > { %2749 = vmatpush3.bf16.msra.mxu0 %v2748_v45  ;;  %2490 = vmatprep.mubr.msk.f32.mxu0 %vm2977_vm6, %v2974_v7  ;;  %v2772_v45 = vpack.c.bf16 %v1674_v41, %v1673_v40  ;;  %v1763_v41 = vld [vmem:[%s3783_s9 + $0x20] sm:$0xff] }
 0x2e4   : > { %2750 = vmatprep.subr.bf16.mxu0 %v2976_v15 }
 0x2e5   : > { %v1177_v57 = vld [vmem:[#allocation2 + $0x1] sm:$0xff] }
 0x2e6   : > { %2428 = vmatmul.mubr.msk.f32.vlgmr.msra.gmra.mrb[8].mxu1 %vm1163_vm7, %v1177_v57  ;;  %v1419_v9 = vld [vmem:[#allocation2 + $0x3] sm:$0xff]  ;;  %v2784_v57 = vpack.c.bf16 %v1682_v56, %v1681_v55  ;;  %v2297_v56 = vld [vmem:[%s3783_s9 + $0xf0] sm:$0xff] }
 0x2e7   : > { %2737 = vmatpush3.bf16.msra.mxu1 %v2736_v51  ;;  %2752 = vmatpush3.bf16.msra.mxu0 %v2751_v52  ;;  %v1334_v10 = vld [vmem:[#allocation2 + $0x2] sm:$0xff]  ;;  %v2778_v51 = vpack.c.bf16 %v1678_v50, %v1677_v49  ;;  %v1679_v52 = vld [vmem:[%s3782_s8 + $0x30] sm:$0xff] }
 0x2e8   : > { %2738 = vmatprep.subr.bf16.mxu1 %v2976_v15  ;;  %2753 = vmatprep.subr.bf16.mxu0 %v2976_v15  ;;  %v1504_v24 = vld [vmem:[#allocation2 + $0x4] sm:$0xff]  ;;  %v2781_v54 = vpack.c.bf16 %v1680_v53, %v1679_v52  ;;  %v2293_v50 = vld [vmem:[%s3783_s9 + $0xd0] sm:$0xff] }
 0x2e9   : > { %2469 = vmatprep.mubr.msk.f32.mxu1 %vm2977_vm6, %v2974_v7  ;;  %v2295_v53 = vld [vmem:[%s3783_s9 + $0xe0] sm:$0xff] }
 0x2eb   : > { %2740 = vmatpush3.bf16.msra.mxu1 %v2739_v58  ;;  %2755 = vmatpush3.bf16.msra.mxu0 %v2754_v59  ;;  %v1683_v58 = vld [vmem:[%s3782_s8 + $0x50] sm:$0xff]  ;;  %v1684_v59 = vld [vmem:[%s3782_s8 + $0x58] sm:$0xff] }
 0x2ec   : > { %2741 = vmatprep.subr.bf16.mxu1 %v2976_v15  ;;  %2756 = vmatprep.subr.bf16.mxu0 %v2976_v15  ;;  %v2787_v60 = vpack.c.bf16 %v1684_v59, %v1683_v58 }
 0x2ef   : > { %2743 = vmatpush3.bf16.msra.mxu1 %v2742_v0  ;;  %2758 = vmatpush3.bf16.msra.mxu0 %v2757_v1  ;;  %v1687_v0 = vld [vmem:[%s3782_s8 + $0x70] sm:$0xff]  ;;  %v1688_v1 = vld [vmem:[%s3782_s8 + $0x78] sm:$0xff] }
 0x2f0   : > { %2744 = vmatprep.subr.bf16.mxu1 %v2976_v15  ;;  %2488 = vmatprep.subr.mxu0 %v2974_v7  ;;  %v2793_v2 = vpack.c.bf16 %v1688_v1, %v1687_v0 }
 0x2f3   : > { %2746 = vmatpush3.bf16.msra.mxu1 %v2745_v4  ;;  %2489 = vmatpush3.msra.mxu0 %v2258_v5  ;;  %v2273_v4 = vld [vmem:[%s3783_s9 + $0x48] sm:$0xff] }
 0x2f4   : > { %2491 = vmatmul.mubr.msk.f32.vlgmr.msra.gmra.mrb[8].mxu0 %vm1163_vm7, %v1419_v9  ;;  %2467 = vmatprep.subr.mxu1 %v2974_v7  ;;  %v2796_v5 = vpack.c.bf16 %v2273_v4, %v2272_v3  ;;  %v2799_v9 = vpack.c.bf16 %v2275_v8, %v2274_v6 }
 0x2f5   : > { %2514 = vmatprep.subr.mxu0 %v2974_v7  ;;  %2516 = vmatprep.mubr.msk.f32.mxu0 %vm2977_vm6, %v2974_v7 }
 0x2f7   : > { %2468 = vmatpush3.msra.mxu1 %v2248_v11  ;;  %v2276_v11 = vld [vmem:[%s3783_s9 + $0x60] sm:$0xff] }
 0x2f8   : > { %2470 = vmatmul.mubr.msk.f32.vlgmr.msra.gmra.mrb[10].mxu1 %vm1163_vm7, %v1334_v10  ;;  %2759 = vmatprep.subr.bf16.mxu1 %v2976_v15  ;;  %v2279_v10 = vld [vmem:[%s3783_s9 + $0x78] sm:$0xff] }
 0x2f9   : > { %2761 = vmatpush3.bf16.msra.mxu1 %v2760_v12  ;;  %2511 = vmatprep.mubr.msk.f32.mxu1 %vm2977_vm6, %v2974_v7  ;;  %v2277_v12 = vld [vmem:[%s3783_s9 + $0x68] sm:$0xff] }
 0x2fa   : > { %2762 = vmatprep.subr.bf16.mxu1 %v2976_v15  ;;  %v2802_v13 = vpack.c.bf16 %v2277_v12, %v2276_v11 }
 0x2fd   : > { %2764 = vmatpush3.bf16.msra.mxu1 %v2763_v16  ;;  %v2805_v16 = vpack.c.bf16 %v2279_v10, %v2278_v14 }
 0x2fe   : > { %2765 = vmatprep.subr.bf16.mxu1 %v2976_v15 }
 0x301   : > { %2767 = vmatpush3.bf16.msra.mxu1 %v2766_v19  ;;  %v2820_v19 = vpack.c.bf16 %v2283_v18, %v2282_v17 }
 0x302   : > { %2768 = vmatprep.subr.bf16.mxu1 %v2976_v15 }
 0x305   : > { %2770 = vmatpush3.bf16.msra.mxu1 %v2769_v22 }
 0x306   : > { %2509 = vmatprep.subr.mxu1 %v2974_v7 }
 0x309   : > { %2510 = vmatpush3.msra.mxu1 %v2268_v23 }
 0x30a   : > { %2512 = vmatmul.mubr.msk.f32.vlgmr.msra.gmra.mrb[12].mxu1 %vm1163_vm7, %v1504_v24  ;;  %2795 = vmatprep.subr.bf16.mxu1 %v2976_v15  ;;  %v2823_v24 = vpack.c.bf16 %v2285_v21, %v2284_v20 }
 0x30b   : > { %2570 = vmatprep.mubr.msk.f32.mxu1 %vm2977_vm6, %v2974_v7  ;;  %2797 = vmatpush3.bf16.msra.mxu1 %v2796_v5 }
 0x30c   : > { %2798 = vmatprep.subr.bf16.mxu1 %v2976_v15 }
 0x30f   : > { %2800 = vmatpush3.bf16.msra.mxu1 %v2799_v9 }
 0x310   : > { %2801 = vmatprep.subr.bf16.mxu1 %v2976_v15 }
 0x313   : > { %2803 = vmatpush3.bf16.msra.mxu1 %v2802_v13 }
 0x314   : > { %2804 = vmatprep.subr.bf16.mxu1 %v2976_v15 }
 0x317   : > { %2806 = vmatpush3.bf16.msra.mxu1 %v2805_v16 }
 0x318   : > { %2807 = vmatprep.subr.bf16.mxu1 %v2976_v15 }
 0x3b5   : > { %v1330_v25 = vpop.f32.mrb[6].mxu0 }
 0x3b6   : > { %v2450_v26 = vpop.f32.mrb[7].mxu0 }
 0x3b7   : > { %v2287_v26 = vld [vmem:[%s3783_s9 + $0xa8] sm:$0xff] }
 0x3b9   : > { %v1257_v27 = vpop.f32.mrb[8].mxu1 }
 0x3ba   : > { %v1331_v28 = vadd.f32 %v1330_v25, %v1257_v27  ;;  %v2429_v29 = vpop.f32.mrb[9].mxu1  ;;  %v2286_v25 = vld [vmem:[%s3783_s9 + $0xa0] sm:$0xff] }
 0x3bb   : > { %v2826_v27 = vpack.c.bf16 %v2287_v26, %v2286_v25  ;;  %v2289_v29 = vld [vmem:[%s3783_s9 + $0xb8] sm:$0xff] }
 0x3c7   : > { %v1499_v30 = vpop.f32.mrb[8].mxu0 }
 0x3c8   : > { %v2492_v31 = vpop.f32.mrb[9].mxu0 }
 0x3c9   : > { %v1759_v31 = vld [vmem:[%s3783_s9] sm:$0xff] }
 0x3cb   : > { %v1414_v32 = vpop.f32.mrb[10].mxu1 }
 0x3cc   : > { %v1418_v33 = vadd.f32 %v1414_v32, %v1331_v28  ;;  %v2471_v34 = vpop.f32.mrb[11].mxu1  ;;  %v2288_v28 = vld [vmem:[%s3783_s9 + $0xb0] sm:$0xff]  ;;  %v1760_v32 = vld [vmem:[%s3783_s9 + $0x8] sm:$0xff] }
 0x3cd   : > { %v2808_v34 = vpack.c.bf16 %v1760_v32, %v1759_v31 }
 0x3ce   : > { %v1503_v35 = vadd.f32 %v1499_v30, %v1418_v33  ;;  %v2829_v30 = vpack.c.bf16 %v2289_v29, %v2288_v28 }
 0x3dd   : > { %v1584_v36 = vpop.f32.mrb[12].mxu1 }
 0x3de   : > { %v1588_v38 = vadd.f32 %v1584_v36, %v1503_v35  ;;  %v2513_v39 = vpop.f32.mrb[13].mxu1 }
 0x3df   : > { %v1762_v39 = vld [vmem:[%s3783_s9 + $0x18] sm:$0xff] }
 0x3e0   : > { %v1596_v42 = vadd.f32 %v2270_v37, %v1588_v38  ;;  %v1761_v38 = vld [vmem:[%s3783_s9 + $0x10] sm:$0xff] }
 0x3e1   : > { %v2811_v40 = vpack.c.bf16 %v1762_v39, %v1761_v38 }
 0x3e2   : > { %v1597_v43 = vmax.f32 %v1596_v42, 0.0  ;;  %v1764_v42 = vld [vmem:[%s3783_s9 + $0x28] sm:$0xff] }
 0x3e4   : > { %2515 = vmatpush3.msra.mxu0 %v1597_v43  ;;  %v2814_v43 = vpack.c.bf16 %v1764_v42, %v1763_v41 }
 0x3e5   : > { %2517 = vmatmul.mubr.msk.f32.vlgmr.msra.gmra.mrb[10].mxu0 %vm1599_vm9, %v1598_v44  ;;  %2771 = vmatprep.subr.bf16.mxu0 %v2976_v15  ;;  %v1765_v44 = vld [vmem:[%s3783_s9 + $0x30] sm:$0xff] }
 0x3e6   : > { %2773 = vmatpush3.bf16.msra.mxu0 %v2772_v45  ;;  %2551 = vmatprep.mubr.msk.f32.mxu0 %vm2977_vm6, %v2974_v7  ;;  %v1766_v45 = vld [vmem:[%s3783_s9 + $0x38] sm:$0xff] }
 0x3e7   : > { %2774 = vmatprep.subr.bf16.mxu0 %v2976_v15  ;;  %v2817_v46 = vpack.c.bf16 %v1766_v45, %v1765_v44 }
 0x3ea   : > { %2776 = vmatpush3.bf16.msra.mxu0 %v2775_v48  ;;  %v2292_v48 = vld [vmem:[%s3783_s9 + $0xc8] sm:$0xff] }
 0x3eb   : > { %2777 = vmatprep.subr.bf16.mxu0 %v2976_v15  ;;  %v2832_v49 = vpack.c.bf16 %v2292_v48, %v2291_v47 }
 0x3ee   : > { %2779 = vmatpush3.bf16.msra.mxu0 %v2778_v51  ;;  %v2294_v51 = vld [vmem:[%s3783_s9 + $0xd8] sm:$0xff] }
 0x3ef   : > { %2780 = vmatprep.subr.bf16.mxu0 %v2976_v15  ;;  %v2835_v52 = vpack.c.bf16 %v2294_v51, %v2293_v50 }
 0x3f2   : > { %2782 = vmatpush3.bf16.msra.mxu0 %v2781_v54  ;;  %v2296_v54 = vld [vmem:[%s3783_s9 + $0xe8] sm:$0xff] }
 0x3f3   : > { %2783 = vmatprep.subr.bf16.mxu0 %v2976_v15  ;;  %v2838_v55 = vpack.c.bf16 %v2296_v54, %v2295_v53 }
 0x3f6   : > { %2785 = vmatpush3.bf16.msra.mxu0 %v2784_v57 }
 0x3f7   : > { %2786 = vmatprep.subr.bf16.mxu0 %v2976_v15 }
 0x3fa   : > { %2788 = vmatpush3.bf16.msra.mxu0 %v2787_v60 }
 0x3fb   : > { %2789 = vmatprep.subr.bf16.mxu0 %v2976_v15 }
 0x3fe   : > { %2791 = vmatpush3.bf16.msra.mxu0 %v2790_v63 }
 0x3ff   : > { %2792 = vmatprep.subr.bf16.mxu0 %v2976_v15 }
 0x402   : > { %2794 = vmatpush3.bf16.msra.mxu0 %v2793_v2 }
 0x403   : > { %2819 = vmatprep.subr.bf16.mxu0 %v2976_v15 }
 0x4b8   : > { %v1669_v22 = vpop.f32.mrb[10].mxu0 }
 0x4b9   : > { %2552 = vmatmul.mubr.f32.vlgmr.msra.gmra.mrb[12].mxu0 %v1669_v22  ;;  %v2518_v23 = vpop.f32.mrb[11].mxu0 }
 0x4ba   : > { %2821 = vmatpush3.bf16.msra.mxu0 %v2820_v19  ;;  %2608 = vmatprep.mubr.msk.f32.mxu0 %vm2977_vm6, %v2974_v7 }
 0x4bb   : > { %2822 = vmatprep.subr.bf16.mxu0 %v2976_v15 }
 0x4be   : > { %2824 = vmatpush3.bf16.msra.mxu0 %v2823_v24 }
 0x4bf   : > { %2825 = vmatprep.subr.bf16.mxu0 %v2976_v15 }
 0x4c2   : > { %2827 = vmatpush3.bf16.msra.mxu0 %v2826_v27 }
 0x4c3   : > { %2828 = vmatprep.subr.bf16.mxu0 %v2976_v15 }
 0x4c6   : > { %2830 = vmatpush3.bf16.msra.mxu0 %v2829_v30 }
 0x58c   : > { %v1755_v33 = vpop.f32.mrb[12].mxu0 }
 0x58d   : > { %v1777_v35 = vrot.slane %v1755_v33, 1  ;;  %v1932_v36 = vrot.slane %v1755_v33, 2  ;;  %v2553_v37 = vpop.f32.mrb[13].mxu0  ;;  %v2015_v58 = vrot.slane %v1755_v33, 3 }
 0x58f   : > { %2571 = vmatmul.mubr.msk.f32.vlgmr.msra.gmra.mrb[14].mxu1 %vm1778_vm10, %v1777_v35  ;;  %2609 = vmatmul.mubr.msk.f32.vlgmr.msra.gmra.mrb[14].mxu0 %vm1778_vm10, %v1932_v36 }
 0x590   : > { %2809 = vmatpush3.bf16.msra.mxu1 %v2808_v34  ;;  %2589 = vmatprep.mubr.msk.f32.mxu1 %vm2977_vm6, %v2974_v7 }
 0x591   : > { %2810 = vmatprep.subr.bf16.mxu1 %v2976_v15 }
 0x594   : > { %2812 = vmatpush3.bf16.msra.mxu1 %v2811_v40 }
 0x595   : > { %2813 = vmatprep.subr.bf16.mxu1 %v2976_v15 }
 0x598   : > { %2815 = vmatpush3.bf16.msra.mxu1 %v2814_v43 }
 0x599   : > { %2816 = vmatprep.subr.bf16.mxu1 %v2976_v15 }
 0x59c   : > { %2818 = vmatpush3.bf16.msra.mxu1 %v2817_v46 }
 0x59d   : > { %2831 = vmatprep.subr.bf16.mxu1 %v2976_v15 }
 0x59f   : > { %2590 = vmatmul.mubr.msk.f32.vlgmr.msra.gmra.mrb[16].mxu1 %vm1778_vm10, %v1755_v33 }
 0x5a0   : > { %2833 = vmatpush3.bf16.msra.mxu1 %v2832_v49  ;;  %2627 = vmatprep.mubr.msk.f32.mxu1 %vm2977_vm6, %v2974_v7  ;;  %v2298_v7 = vld [vmem:[%s3783_s9 + $0xf8] sm:$0xff] }
 0x5a1   : > { %2834 = vmatprep.subr.bf16.mxu1 %v2976_v15  ;;  %v2841_v57 = vpack.c.bf16 %v2298_v7, %v2297_v56 }
 0x5a4   : > { %2836 = vmatpush3.bf16.msra.mxu1 %v2835_v52 }
 0x5a5   : > { %2837 = vmatprep.subr.bf16.mxu1 %v2976_v15 }
 0x5a8   : > { %2839 = vmatpush3.bf16.msra.mxu1 %v2838_v55 }
 0x5a9   : > { %2840 = vmatprep.subr.bf16.mxu1 %v2976_v15  ;;  %v2089_v15 = vld [vmem:[%s3784_s10] sm:$0x1] }
 0x5ac   : > { %2842 = vmatpush3.bf16.msra.mxu1 %v2841_v57 }
 0x5af   : > { %2628 = vmatmul.mubr.msk.f32.vlgmr.msra.gmra.mrb[18].mxu1 %vm1778_vm10, %v2015_v58 }
 0x662   : > { %v1847_v59 = vpop.f32.mrb[14].mxu1  ;;  %v2001_v60 = vpop.f32.mrb[14].mxu0 }
 0x663   : > { %v2572_v61 = vpop.f32.mrb[15].mxu1  ;;  %v2610_v62 = vpop.f32.mrb[15].mxu0 }
 0x672   : > { %v1919_v63 = vpop.f32.mrb[16].mxu1 }
 0x673   : > { %v1920_v0 = vadd.f32 %v1919_v63, %v1847_v59  ;;  %v2591_v1 = vpop.f32.mrb[17].mxu1 }
 0x675   : > { %v2005_v2 = vadd.f32 %v2001_v60, %v1920_v0 }
 0x682   : > { %v2084_v3 = vpop.f32.mrb[18].mxu1 }
 0x683   : > { %v2088_v4 = vadd.f32 %v2084_v3, %v2005_v2  ;;  %v2629_v5 = vpop.f32.mrb[19].mxu1 }
 0x685   : > { %v2090_v6 = vadd.f32 %v2089_v15, %v2088_v4 }
 0x687   : > { %v2091_v8 = vmax.f32 %v2090_v6, 0.0 }
 0x689   : > { %2093 = vst.msk [vmem:[%s378_s14] sm:$0x1] %vm2092_vm11, %v2091_v8 }
 0x68a   : > { %2923 = shalt.err (!%p2920_p3)
}
 0x68b   : > { %s2924_s30 = scalar_lea.hbm %s3732_s24, 16  ;;  %s2928_s14 = scalar_lea.hbm %s3785_s11, 32 }
 0x68c   : > { %p2925_p4 = scmp.ne.s32.totalorder %s3732_s24, %s2924_s30  ;;  %p2929_p9 = scmp.lt.u32.totalorder %s3732_s24, %s3785_s11 }
 0x68d   : > { %p2930_p10 = scmp.lt.u32.totalorder %s2928_s14, %s2924_s30  ;;  %p2932_p12 = scmp.lt.u32.totalorder %s2924_s30, %s3732_s24 }
 0x68e   : > { %p2926_p7 = pnand %p2925_p4, %p3077_p5 }
 0x68f   : > { %p2931_p11 = por %p2930_p10, %p2929_p9 }
 0x690   : > { %p2927_p8 = pneg %p2926_p7 }
 0x691   : > { %p2933_p13 = por %p2932_p12, %p2931_p11 }
 0x693   : > { %p2934_p0 = pnand %p2933_p13, %p2927_p8 }
 0x695   : > { %2937 = shalt.err (!%p2934_p0)
}
 0x696   : > { %2867 = dma.vmem_to_hbm [thread:$0]  (%p3077_p5), %s3734_s19, 16, %s3732_s24, %s2095_s29  }
 0x697 PF: > { %p2873_p1 = scmp.ge.s32.totalorder %s2972_s20, 2  ;;  %s2119_s25 = sand.u32 1, %s2960_s17  }
 0x698   : > { %s2120_s21 = scalar_lea.sflag [#allocation4], %s2119_s25 }
 0x699   : > { %p2870_p2 = pnand %p2873_p1, %p3081_p6 }
 0x69b   : > { %2955 = dma.done.wait (!%p2870_p2), %s2120_s21, 16  }
 0x69c   : > { %2957 = vsyncadd (!%p2870_p2), %s2120_s21, 4294967280  ;;  %s3793_s16 = sld [smem:[#allocation6_spill]]  ;;  %s3794_s19 = sld [smem:[#allocation7_spill]] }
 0x69d   : > { %p21_p3 = scmp.ge.s32.totalorder %s3064_s23, 4   ;;  %s3795_s17 = smov %s2964_s18 }
 0x69e   : > { %s3797_s20 = smov %s3064_s23 }
 0x69f   :  { %23 = sbr.rel (!%p21_p3) target bundleno = 3 (0x3), region = 110 }
 0x6a2   : > { %s3796_s18 = smov %s3793_s16 }
 0x6a6   :  { %2124 = vsyncpa [#allocation4], 1 }
 0x6a7   :  { %2126 = vsyncpa [#allocation4 + $0x1], 1 }

</bundles_post_ra>
